<compile_context>
chip_gen: v5e
topology: v5e:2x2
jax: 0.10.0
libtpu: 0.0.40
codegen_flags: <defaults>
</compile_context>

<pallas_src>
import functools

import jax
import jax.numpy as jnp
import numpy as np
from jax.experimental import pallas as pl
from jax.experimental.pallas import tpu as pltpu

PAD = 0          # Constants.PAD
LN_EPS = 1e-5    # nn.LayerNorm default eps
NEG_BIG = -1e30  # additive stand-in for masked_fill(-inf); benign (pad rows re-zeroed)


# --------------------------- parameter helpers -------------------------------
def sinusoid_encoding_table(n_position, d_hid):
    """get_sinusoid_encoding_table with padding_idx=0."""
    pos = np.arange(n_position, dtype=np.float64)[:, None]
    hid = np.arange(d_hid)[None, :]
    angle = pos / np.power(10000.0, 2.0 * (hid // 2) / d_hid)
    table = np.zeros((n_position, d_hid), dtype=np.float64)
    table[:, 0::2] = np.sin(angle[:, 0::2])
    table[:, 1::2] = np.cos(angle[:, 1::2])
    table[0] = 0.0
    return jnp.asarray(table, dtype=jnp.float32)


def _round_up(n, m=128):
    return ((n + m - 1) // m) * m


def _pick_vmem_limit():
    """~3/4 of physical VMEM: ~96 MiB on v5e/v6e (128 MiB phys), ~48 MiB on v7x (64 MiB)."""
    try:
        cap = pltpu.get_tpu_info().vmem_capacity_bytes
    except Exception:
        cap = 64 * 1024 * 1024
    return int(min(cap * 3 // 4, 100 * 1024 * 1024))


def init_params(key, n_src_vocab, n_labels, len_max_seq, d_model, d_inner,
                n_layers, n_head, d_k, d_v):
    """Weights created directly in the kernel-friendly layout:
       - per-layer tensors stacked along a leading (n_layers, ...) axis,
       - QKV projections fused into a single (D, H*(2*d_k+d_v)) bf16 matrix
         (columns: [Q|K|V], head-major inside each part),
       - output projection fused into a single (H*d_v, D) bf16 matrix,
       - label-head hidden h1 and the label dim zero-padded to multiples of 128
         (mathematically identical to the unpadded model; ReLU(0)=0)."""
    n_position = len_max_seq + 1
    keys = iter(jax.random.split(key, 32 + 8 * n_layers))

    def rnd(shape, scale=0.02):
        return scale * jax.random.normal(next(keys), shape, dtype=jnp.float32)

    word_emb = rnd((n_src_vocab, d_model), 1.0).at[PAD].set(0.0)    # padding_idx=0
    seg_emb = rnd((n_position // 2, d_model), 1.0).at[0].set(0.0)   # padding_idx=0
    pos_table = sinusoid_encoding_table(n_position, d_model)

    bf = jnp.bfloat16
    D, H = d_model, n_head
    w_qkv = H * (2 * d_k + d_v)

    def stack(shape, dtype=jnp.float32):
        return jnp.stack([rnd(shape) for _ in range(n_layers)]).astype(dtype)

    layers_stacked = (
        stack((D, w_qkv), bf), stack((1, w_qkv)),              # fused W_{q|k|v}, bias
        stack((H * d_v, D), bf), stack((1, D)),                # fused out-proj fc, b_o
        jnp.ones((n_layers, 1, D), jnp.float32),               # LN1 gamma
        jnp.zeros((n_layers, 1, D), jnp.float32),              # LN1 beta
        stack((D, d_inner), bf), stack((1, d_inner)),          # FFN w_1 (1x1 conv)
        stack((d_inner, D), bf), stack((1, D)),                # FFN w_2 (1x1 conv)
        jnp.ones((n_layers, 1, D), jnp.float32),               # LN2 gamma
        jnp.zeros((n_layers, 1, D), jnp.float32),              # LN2 beta
    )

    # tgt_label_prj MLP: Linear(D, D+512) -> ReLU -> Linear(., D) -> ReLU
    #                    -> Linear(D, 512) -> ReLU -> Linear(512, n_labels)
    h1, h2, h3 = d_model + 512, d_model, 512
    h1p = _round_up(h1)                 # lane-dense hidden (zero-padded columns/rows)
    lblp = _round_up(n_labels)          # lane-dense output (sliced back in wrapper)
    hw1 = jnp.zeros((d_model, h1p), jnp.float32).at[:, :h1].set(rnd((d_model, h1))).astype(bf)
    hb1 = jnp.zeros((1, h1p), jnp.float32).at[:, :h1].set(rnd((1, h1)))
    hw2 = jnp.zeros((h1p, h2), jnp.float32).at[:h1, :].set(rnd((h1, h2))).astype(bf)
    hb2 = rnd((1, h2))
    hw3 = rnd((h2, h3)).astype(bf)
    hb3 = rnd((1, h3))
    hw4 = jnp.zeros((h3, lblp), jnp.float32).at[:, :n_labels].set(rnd((h3, n_labels))).astype(bf)
    hb4 = jnp.zeros((1, lblp), jnp.float32).at[:, :n_labels].set(rnd((1, n_labels)))
    head = (hw1, hb1, hw2, hb2, hw3, hb3, hw4, hb4)

    return {"word_emb": word_emb, "seg_emb": seg_emb, "pos_table": pos_table,
            "layers_stacked": layers_stacked, "head": head,
            "n_labels": n_labels, "n_layers": n_layers}


# ------------------------------ fused Pallas kernel ----------------------------
def fused_transformer_kernel(*refs, tb, Lp, n_head, d_k, d_v):
    """Grid = (batch_tile 'parallel', layer 'arbitrary').
       Activations stay VMEM-resident in x_scr across the layer axis; only the current
       layer's weight slab is streamed per step.  On the last layer the label-head MLP
       runs and writes the (lane-dense, padded) logits for this batch tile."""
    (x_ref, bias_ref, npad_ref,
     wqkv_ref, bqkv_ref, wo_ref, bo_ref, g1_ref, be1_ref,
     w1_ref, b1_ref, w2_ref, b2_ref, g2_ref, be2_ref,
     hw1_ref, hb1_ref, hw2_ref, hb2_ref, hw3_ref, hb3_ref, hw4_ref, hb4_ref,
     out_ref, x_scr, ctx_scr) = refs

    layer = pl.program_id(1)
    n_layers = pl.num_programs(1)
    H = n_head
    Mt = tb * Lp

    @pl.when(layer == 0)
    def _():
        x_scr[...] = x_ref[...]

    x = x_scr[...]                      # (Mt, D) f32, resident across layers
    npad = npad_ref[...]                # (Mt, 1)  1.0 where token != PAD
    bias = bias_ref[...]                # (tb, 1, Lp) additive key-pad bias (-1e30 / 0)

    # ---- multi-head self-attention (dropout = identity at inference) ----
    # Fused QKV projection: ONE lane-dense MXU matmul, full-D contraction.
    x_bf = x.astype(jnp.bfloat16)
    qkv = jnp.dot(x_bf, wqkv_ref[0],
                  preferred_element_type=jnp.float32) + bqkv_ref[0]   # (Mt, H*(2dk+dv))

    q_off, k_off, v_off = 0, H * d_k, 2 * H * d_k
    scale = 1.0 / (d_k ** 0.5)

    # Per-head scores/softmax/context (unrolled; bounded (tb, Lp, Lp) scores per head).
    for h in range(H):
        qh = qkv[:, q_off + h * d_k: q_off + (h + 1) * d_k].astype(jnp.bfloat16)
        kh = qkv[:, k_off + h * d_k: k_off + (h + 1) * d_k].astype(jnp.bfloat16)
        vh = qkv[:, v_off + h * d_v: v_off + (h + 1) * d_v].astype(jnp.bfloat16)
        qh = qh.reshape(tb, Lp, d_k)
        kh = kh.reshape(tb, Lp, d_k)
        vh = vh.reshape(tb, Lp, d_v)

        s = jnp.einsum('bqd,bkd->bqk', qh, kh,
                       preferred_element_type=jnp.float32)            # (tb, Lp, Lp)
        s = s * scale + bias                                          # temp + key-pad mask
        s = s - jnp.max(s, axis=-1, keepdims=True)
        p = jnp.exp(s)
        p = p * pl.reciprocal(jnp.sum(p, axis=-1, keepdims=True), approx=True)
        ch = jnp.einsum('bqk,bkd->bqd', p.astype(jnp.bfloat16), vh,
                        preferred_element_type=jnp.float32)           # (tb, Lp, d_v)
        ctx_scr[:, h * d_v:(h + 1) * d_v] = ch.reshape(Mt, d_v)

    # Fused output projection: ONE (Mt, H*d_v) @ (H*d_v, D) matmul.
    attn = jnp.dot(ctx_scr[...].astype(jnp.bfloat16), wo_ref[0],
                   preferred_element_type=jnp.float32) + bo_ref[0]    # (Mt, D)

    y = attn + x                                                      # residual
    mu = jnp.mean(y, axis=-1, keepdims=True)                          # LayerNorm 1 (f32)
    var = jnp.mean(y * y, axis=-1, keepdims=True) - mu * mu           # single-pass stats
    y = (y - mu) * jax.lax.rsqrt(var + LN_EPS) * g1_ref[0] + be1_ref[0]
    y = y * npad                                                      # non_pad_mask

    # ---- position-wise FFN (1x1 convs) ----
    ff = jnp.maximum(jnp.dot(y.astype(jnp.bfloat16), w1_ref[0],
                             preferred_element_type=jnp.float32) + b1_ref[0], 0.0)
    z = jnp.dot(ff.astype(jnp.bfloat16), w2_ref[0],
                preferred_element_type=jnp.float32) + b2_ref[0] + y   # residual
    mu2 = jnp.mean(z, axis=-1, keepdims=True)                         # LayerNorm 2 (f32)
    var2 = jnp.mean(z * z, axis=-1, keepdims=True) - mu2 * mu2
    z = (z - mu2) * jax.lax.rsqrt(var2 + LN_EPS) * g2_ref[0] + be2_ref[0]
    z = z * npad                                                      # non_pad_mask

    x_scr[...] = z                                                    # carry to next layer

    # ---- tgt_label_prj MLP on the final encoder output (fused, last layer only) ----
    # TODO(synk): on v7x at production sizes, DMA these head weights in late
    # (memory_space=pl.ANY + make_async_copy at layer n_layers-2) instead of keeping
    # them VMEM-resident for all layers.
    @pl.when(layer == n_layers - 1)
    def _():
        a = jnp.maximum(jnp.dot(z.astype(jnp.bfloat16), hw1_ref[...],
                                preferred_element_type=jnp.float32) + hb1_ref[...], 0.0)
        a = jnp.maximum(jnp.dot(a.astype(jnp.bfloat16), hw2_ref[...],
                                preferred_element_type=jnp.float32) + hb2_ref[...], 0.0)
        a = jnp.maximum(jnp.dot(a.astype(jnp.bfloat16), hw3_ref[...],
                                preferred_element_type=jnp.float32) + hb3_ref[...], 0.0)
        out_ref[...] = jnp.dot(a.astype(jnp.bfloat16), hw4_ref[...],
                               preferred_element_type=jnp.float32) + hb4_ref[...]


# ------------------------------ Transformer.forward ----------------------------
def transformer_forward(params, src_seq, src_pos, src_seg, tgt_seq, *,
                        n_head, d_k, d_v, tb=None):
    tgt_seq = tgt_seq[:, :-1]            # matches reference; otherwise unused downstream
    B, L = src_seq.shape
    D = params["word_emb"].shape[1]
    n_layers = params["n_layers"]
    n_labels = params["n_labels"]

    # pad sequence length to a sublane multiple with PAD tokens (exact equivalence;
    # at production sizes pad to a multiple of 128 for fully lane-dense scores).
    Lp = _round_up(L, 8)
    if Lp != L:
        padcfg = ((0, 0), (0, Lp - L))
        src_seq = jnp.pad(src_seq, padcfg)    # PAD == 0 (emb rows 0 are all-zero)
        src_pos = jnp.pad(src_pos, padcfg)
        src_seg = jnp.pad(src_seg, padcfg)

    if tb is None:
        tb = 1
    assert B % tb == 0
    nb = B // tb
    M = B * Lp
    Mt = tb * Lp

    # glue (outside the kernel): pad masks + embedding-table gathers
    attn_bias = ((src_seq == PAD).astype(jnp.float32) * NEG_BIG)[:, None, :]   # (B, 1, Lp)
    non_pad = (src_seq != PAD).astype(jnp.float32).reshape(M, 1)               # (M, 1)

    x = (params["word_emb"][src_seq]
         + params["pos_table"][src_pos]
         + params["seg_emb"][src_seg]).astype(jnp.float32).reshape(M, D)

    stacked = params["layers_stacked"]
    head = params["head"]
    lblp = head[-1].shape[-1]

    def const_spec(a):                    # fetched once (block index constant over grid)
        nd = a.ndim
        return pl.BlockSpec(a.shape, lambda b, l, _nd=nd: (0,) * _nd)

    def layer_spec(a):                    # one layer's weight slab per grid step
        nd = a.ndim
        return pl.BlockSpec((1,) + a.shape[1:],
                            lambda b, l, _nd=nd: (l,) + (0,) * (_nd - 1))

    in_specs = (
        [pl.BlockSpec((Mt, D), lambda b, l: (b, 0)),          # activations (batch tile)
         pl.BlockSpec((tb, 1, Lp), lambda b, l: (b, 0, 0)),   # key-pad bias (batch tile)
         pl.BlockSpec((Mt, 1), lambda b, l: (b, 0))]          # non-pad mask (batch tile)
        + [layer_spec(w) for w in stacked]
        + [const_spec(w) for w in head])

    kernel = functools.partial(fused_transformer_kernel,
                               tb=tb, Lp=Lp, n_head=n_head, d_k=d_k, d_v=d_v)

    out_padded = pl.pallas_call(
        kernel,
        out_shape=jax.ShapeDtypeStruct((M, lblp), jnp.float32),
        grid=(nb, n_layers),                                  # batch tiles x layers
        in_specs=in_specs,
        out_specs=pl.BlockSpec((Mt, lblp), lambda b, l: (b, 0)),
        scratch_shapes=[pltpu.VMEM((Mt, D), jnp.float32),             # resident activations
                        pltpu.VMEM((Mt, n_head * d_v), jnp.float32)], # per-layer ctx concat
        compiler_params=pltpu.CompilerParams(
            dimension_semantics=("parallel", "arbitrary"),
            vmem_limit_bytes=_pick_vmem_limit(),
        ),
    )(x, attn_bias, non_pad, *stacked, *head)

    out = out_padded[:, :n_labels].reshape(B, Lp, n_labels)[:, :L, :]
    return out


# ----------------------------------- main --------------------------------------
if __name__ == "__main__":
    # small config consistent with Transformer.__init__
    n_src_vocab, n_labels = 50, 6
    len_max_seq_enc = 16
    d_word_vec = d_model = 32
    d_inner = 64
    n_layers = 2
    n_head, d_k, d_v = 2, 8, 8
    B, L = 2, 8

    key = jax.random.PRNGKey(0)
    pkey, dkey = jax.random.split(key)
    params = init_params(pkey, n_src_vocab, n_labels, len_max_seq_enc,
                         d_model, d_inner, n_layers, n_head, d_k, d_v)

    k1, k2, k3 = jax.random.split(dkey, 3)
    src_seq = jax.random.randint(k1, (B, L), 1, n_src_vocab).astype(jnp.int32)
    src_seq = src_seq.at[1, -2:].set(PAD)                       # add some padding
    positions = jnp.arange(1, L + 1, dtype=jnp.int32)[None, :]
    src_pos = jnp.where(src_seq != PAD, positions, 0).astype(jnp.int32)
    n_seg = (len_max_seq_enc + 1) // 2                          # int(n_position / 2)
    src_seg = jnp.where(src_seq != PAD,
                        jax.random.randint(k2, (B, L), 1, n_seg), 0).astype(jnp.int32)
    tgt_seq = jax.random.randint(k3, (B, 5), 1, n_src_vocab).astype(jnp.int32)

    out = transformer_forward(params, src_seq, src_pos, src_seg, tgt_seq,
                              n_head=n_head, d_k=d_k, d_v=d_v, tb=1)
    out = jax.block_until_ready(out)
    assert out.shape == (B, L, n_labels), out.shape
    assert bool(jnp.all(jnp.isfinite(out)))
    print("KERNEL_OK")
</pallas_src>

<mosaic_0001>
module attributes {stable_mosaic.version = 11 : i64} {
  func.func @fused_transformer_kernel(%arg0: i32, %arg1: i32, %arg2: memref<8x32xf32, #tpu.memory_space<vmem>>, %arg3: memref<1x1x8xf32, #tpu.memory_space<vmem>>, %arg4: memref<8x1xf32, #tpu.memory_space<vmem>>, %arg5: memref<1x32x48xbf16, #tpu.memory_space<vmem>>, %arg6: memref<1x1x48xf32, #tpu.memory_space<vmem>>, %arg7: memref<1x16x32xbf16, #tpu.memory_space<vmem>>, %arg8: memref<1x1x32xf32, #tpu.memory_space<vmem>>, %arg9: memref<1x1x32xf32, #tpu.memory_space<vmem>>, %arg10: memref<1x1x32xf32, #tpu.memory_space<vmem>>, %arg11: memref<1x32x64xbf16, #tpu.memory_space<vmem>>, %arg12: memref<1x1x64xf32, #tpu.memory_space<vmem>>, %arg13: memref<1x64x32xbf16, #tpu.memory_space<vmem>>, %arg14: memref<1x1x32xf32, #tpu.memory_space<vmem>>, %arg15: memref<1x1x32xf32, #tpu.memory_space<vmem>>, %arg16: memref<1x1x32xf32, #tpu.memory_space<vmem>>, %arg17: memref<32x640xbf16, #tpu.memory_space<vmem>>, %arg18: memref<1x640xf32, #tpu.memory_space<vmem>>, %arg19: memref<640x32xbf16, #tpu.memory_space<vmem>>, %arg20: memref<1x32xf32, #tpu.memory_space<vmem>>, %arg21: memref<32x512xbf16, #tpu.memory_space<vmem>>, %arg22: memref<1x512xf32, #tpu.memory_space<vmem>>, %arg23: memref<512x128xbf16, #tpu.memory_space<vmem>>, %arg24: memref<1x128xf32, #tpu.memory_space<vmem>>, %arg25: memref<8x128xf32, #tpu.memory_space<vmem>>, %arg26: memref<8x32xf32, #tpu.memory_space<vmem>>, %arg27: memref<8x16xf32, #tpu.memory_space<vmem>>) attributes {dimension_semantics = [#tpu.dimension_semantics<parallel>, #tpu.dimension_semantics<arbitrary>], iteration_bounds = array<i64: 2, 2>, scalar_prefetch = 0 : i64, scratch_operands = 2 : i64, tpu.core_type = #tpu.core_type<tc>, window_params = [{transform_indices = @transform_0, window_bounds = array<i64: 8, 32>}, {transform_indices = @transform_1, window_bounds = array<i64: 1, 1, 8>}, {transform_indices = @transform_2, window_bounds = array<i64: 8, 1>}, {transform_indices = @transform_3, window_bounds = array<i64: 1, 32, 48>}, {transform_indices = @transform_4, window_bounds = array<i64: 1, 1, 48>}, {transform_indices = @transform_5, window_bounds = array<i64: 1, 16, 32>}, {transform_indices = @transform_6, window_bounds = array<i64: 1, 1, 32>}, {transform_indices = @transform_7, window_bounds = array<i64: 1, 1, 32>}, {transform_indices = @transform_8, window_bounds = array<i64: 1, 1, 32>}, {transform_indices = @transform_9, window_bounds = array<i64: 1, 32, 64>}, {transform_indices = @transform_10, window_bounds = array<i64: 1, 1, 64>}, {transform_indices = @transform_11, window_bounds = array<i64: 1, 64, 32>}, {transform_indices = @transform_12, window_bounds = array<i64: 1, 1, 32>}, {transform_indices = @transform_13, window_bounds = array<i64: 1, 1, 32>}, {transform_indices = @transform_14, window_bounds = array<i64: 1, 1, 32>}, {pipeline_mode = #tpu.pipeline_mode<synchronous>, transform_indices = @transform_15, window_bounds = array<i64: 32, 640>}, {pipeline_mode = #tpu.pipeline_mode<synchronous>, transform_indices = @transform_16, window_bounds = array<i64: 1, 640>}, {pipeline_mode = #tpu.pipeline_mode<synchronous>, transform_indices = @transform_17, window_bounds = array<i64: 640, 32>}, {pipeline_mode = #tpu.pipeline_mode<synchronous>, transform_indices = @transform_18, window_bounds = array<i64: 1, 32>}, {pipeline_mode = #tpu.pipeline_mode<synchronous>, transform_indices = @transform_19, window_bounds = array<i64: 32, 512>}, {pipeline_mode = #tpu.pipeline_mode<synchronous>, transform_indices = @transform_20, window_bounds = array<i64: 1, 512>}, {pipeline_mode = #tpu.pipeline_mode<synchronous>, transform_indices = @transform_21, window_bounds = array<i64: 512, 128>}, {pipeline_mode = #tpu.pipeline_mode<synchronous>, transform_indices = @transform_22, window_bounds = array<i64: 1, 128>}, {transform_indices = @transform_23, window_bounds = array<i64: 8, 128>}]} {
    %c0_i32 = arith.constant 0 : i32
    %0 = arith.cmpi eq, %arg1, %c0_i32 : i32
    %1 = arith.extui %0 : i1 to i32
    %c0_i32_0 = arith.constant 0 : i32
    %2 = arith.cmpi ne, %1, %c0_i32_0 : i32
    scf.if %2 {
      %c0_75 = arith.constant 0 : index
      %c0_76 = arith.constant 0 : index
      %159 = vector.load %arg2[%c0_75, %c0_76] : memref<8x32xf32, #tpu.memory_space<vmem>>, vector<8x32xf32>
      %c0_77 = arith.constant 0 : index
      %c0_78 = arith.constant 0 : index
      %160 = vector.load %arg26[%c0_77, %c0_78] : memref<8x32xf32, #tpu.memory_space<vmem>>, vector<8x32xf32>
      tpu.vector_store %arg26[%c0_77, %c0_78], %159 {strides = array<i32>} : memref<8x32xf32, #tpu.memory_space<vmem>>, vector<8x32xf32>,
    } else {
    }
    %c0 = arith.constant 0 : index
    %c0_1 = arith.constant 0 : index
    %3 = vector.load %arg26[%c0, %c0_1] : memref<8x32xf32, #tpu.memory_space<vmem>>, vector<8x32xf32>
    %c0_2 = arith.constant 0 : index
    %c0_3 = arith.constant 0 : index
    %4 = vector.load %arg4[%c0_2, %c0_3] : memref<8x1xf32, #tpu.memory_space<vmem>>, vector<8x1xf32>
    %c0_4 = arith.constant 0 : index
    %c0_5 = arith.constant 0 : index
    %c0_6 = arith.constant 0 : index
    %5 = vector.load %arg3[%c0_4, %c0_5, %c0_6] : memref<1x1x8xf32, #tpu.memory_space<vmem>>, vector<1x1x8xf32>
    %6 = arith.truncf %3 : vector<8x32xf32> to vector<8x32xbf16>
    %c0_7 = arith.constant 0 : index
    %c0_8 = arith.constant 0 : index
    %c0_9 = arith.constant 0 : index
    %7 = vector.load %arg5[%c0_7, %c0_8, %c0_9] : memref<1x32x48xbf16, #tpu.memory_space<vmem>>, vector<1x32x48xbf16>
    %8 = vector.shape_cast %7 : vector<1x32x48xbf16> to vector<32x48xbf16>
    %cst = arith.constant dense<0.000000e+00> : vector<8x48xf32>
    %9 = tpu.matmul %6, %8, %cst {dimension_numbers = #tpu.dot_dimension_numbers<[1], [0], [0], [1], [0, 0, 1, 1], [], []>} : vector<8x32xbf16>, vector<32x48xbf16>, vector<8x48xf32> -> vector<8x48xf32>
    %c0_10 = arith.constant 0 : index
    %c0_11 = arith.constant 0 : index
    %c0_12 = arith.constant 0 : index
    %10 = vector.load %arg6[%c0_10, %c0_11, %c0_12] : memref<1x1x48xf32, #tpu.memory_space<vmem>>, vector<1x1x48xf32>
    %11 = vector.shape_cast %10 : vector<1x1x48xf32> to vector<1x48xf32>
    %12 = vector.broadcast %11 : vector<1x48xf32> to vector<8x48xf32>
    %13 = arith.addf %9, %12 : vector<8x48xf32>
    %14 = vector.extract_strided_slice %13 {offsets = [0, 0], sizes = [8, 8], strides = [1, 1]} : vector<8x48xf32> to vector<8x8xf32>
    %15 = arith.truncf %14 : vector<8x8xf32> to vector<8x8xbf16>
    %16 = vector.extract_strided_slice %13 {offsets = [0, 16], sizes = [8, 8], strides = [1, 1]} : vector<8x48xf32> to vector<8x8xf32>
    %17 = arith.truncf %16 : vector<8x8xf32> to vector<8x8xbf16>
    %18 = vector.extract_strided_slice %13 {offsets = [0, 32], sizes = [8, 8], strides = [1, 1]} : vector<8x48xf32> to vector<8x8xf32>
    %19 = arith.truncf %18 : vector<8x8xf32> to vector<8x8xbf16>
    %20 = vector.shape_cast %15 : vector<8x8xbf16> to vector<1x8x8xbf16>
    %21 = vector.shape_cast %17 : vector<8x8xbf16> to vector<1x8x8xbf16>
    %22 = vector.shape_cast %19 : vector<8x8xbf16> to vector<1x8x8xbf16>
    "tpu.trace_start"() <{level = 10 : i32, message = "bqd,bkd->bqk"}> : () -> ()
    %cst_13 = arith.constant dense<0.000000e+00> : vector<1x8x8xf32>
    %23 = tpu.matmul %20, %21, %cst_13 {dimension_numbers = #tpu.dot_dimension_numbers<[2], [2], [1], [1], [0, 0, 0, 1, 1, 1], [0], [0]>} : vector<1x8x8xbf16>, vector<1x8x8xbf16>, vector<1x8x8xf32> -> vector<1x8x8xf32>
    "tpu.trace_stop"() : () -> ()
    %cst_14 = arith.constant 0.353553385 : f32
    %24 = vector.broadcast %cst_14 : f32 to vector<1x8x8xf32>
    %25 = arith.mulf %23, %24 : vector<1x8x8xf32>
    %26 = vector.broadcast %5 : vector<1x1x8xf32> to vector<1x8x8xf32>
    %27 = arith.addf %25, %26 : vector<1x8x8xf32>
    %cst_15 = arith.constant dense<0xFF800000> : vector<1x8xf32>
    %28 = vector.multi_reduction <maximumf>, %27, %cst_15 [2] : vector<1x8x8xf32> to vector<1x8xf32>
    %29 = vector.shape_cast %28 : vector<1x8xf32> to vector<1x8x1xf32>
    %30 = vector.broadcast %29 : vector<1x8x1xf32> to vector<1x8x8xf32>
    %31 = arith.subf %27, %30 : vector<1x8x8xf32>
    %32 = math.exp %31 : vector<1x8x8xf32>
    %cst_16 = arith.constant dense<0.000000e+00> : vector<1x8xf32>
    %33 = vector.multi_reduction <add>, %32, %cst_16 [2] : vector<1x8x8xf32> to vector<1x8xf32>
    %34 = vector.shape_cast %33 : vector<1x8xf32> to vector<1x8x1xf32>
    %35 = tpu.reciprocal %34 {approx = true} : vector<1x8x1xf32> -> vector<1x8x1xf32>
    %36 = vector.broadcast %35 : vector<1x8x1xf32> to vector<1x8x8xf32>
    %37 = arith.mulf %32, %36 : vector<1x8x8xf32>
    %38 = arith.truncf %37 : vector<1x8x8xf32> to vector<1x8x8xbf16>
    "tpu.trace_start"() <{level = 10 : i32, message = "bqk,bkd->bqd"}> : () -> ()
    %cst_17 = arith.constant dense<0.000000e+00> : vector<1x8x8xf32>
    %39 = tpu.matmul %38, %22, %cst_17 {dimension_numbers = #tpu.dot_dimension_numbers<[2], [1], [1], [2], [0, 0, 0, 1, 1, 2], [0], [0]>} : vector<1x8x8xbf16>, vector<1x8x8xbf16>, vector<1x8x8xf32> -> vector<1x8x8xf32>
    "tpu.trace_stop"() : () -> ()
    %40 = vector.shape_cast %39 : vector<1x8x8xf32> to vector<8x8xf32>
    %c0_18 = arith.constant 0 : index
    %c0_19 = arith.constant 0 : index
    %41 = vector.load %arg27[%c0_18, %c0_19] : memref<8x16xf32, #tpu.memory_space<vmem>>, vector<8x8xf32>
    tpu.vector_store %arg27[%c0_18, %c0_19], %40 {strides = array<i32>} : memref<8x16xf32, #tpu.memory_space<vmem>>, vector<8x8xf32>,
    %42 = vector.extract_strided_slice %13 {offsets = [0, 8], sizes = [8, 8], strides = [1, 1]} : vector<8x48xf32> to vector<8x8xf32>
    %43 = arith.truncf %42 : vector<8x8xf32> to vector<8x8xbf16>
    %44 = vector.extract_strided_slice %13 {offsets = [0, 24], sizes = [8, 8], strides = [1, 1]} : vector<8x48xf32> to vector<8x8xf32>
    %45 = arith.truncf %44 : vector<8x8xf32> to vector<8x8xbf16>
    %46 = vector.extract_strided_slice %13 {offsets = [0, 40], sizes = [8, 8], strides = [1, 1]} : vector<8x48xf32> to vector<8x8xf32>
    %47 = arith.truncf %46 : vector<8x8xf32> to vector<8x8xbf16>
    %48 = vector.shape_cast %43 : vector<8x8xbf16> to vector<1x8x8xbf16>
    %49 = vector.shape_cast %45 : vector<8x8xbf16> to vector<1x8x8xbf16>
    %50 = vector.shape_cast %47 : vector<8x8xbf16> to vector<1x8x8xbf16>
    "tpu.trace_start"() <{level = 10 : i32, message = "bqd,bkd->bqk"}> : () -> ()
    %cst_20 = arith.constant dense<0.000000e+00> : vector<1x8x8xf32>
    %51 = tpu.matmul %48, %49, %cst_20 {dimension_numbers = #tpu.dot_dimension_numbers<[2], [2], [1], [1], [0, 0, 0, 1, 1, 1], [0], [0]>} : vector<1x8x8xbf16>, vector<1x8x8xbf16>, vector<1x8x8xf32> -> vector<1x8x8xf32>
    "tpu.trace_stop"() : () -> ()
    %cst_21 = arith.constant 0.353553385 : f32
    %52 = vector.broadcast %cst_21 : f32 to vector<1x8x8xf32>
    %53 = arith.mulf %51, %52 : vector<1x8x8xf32>
    %54 = vector.broadcast %5 : vector<1x1x8xf32> to vector<1x8x8xf32>
    %55 = arith.addf %53, %54 : vector<1x8x8xf32>
    %cst_22 = arith.constant dense<0xFF800000> : vector<1x8xf32>
    %56 = vector.multi_reduction <maximumf>, %55, %cst_22 [2] : vector<1x8x8xf32> to vector<1x8xf32>
    %57 = vector.shape_cast %56 : vector<1x8xf32> to vector<1x8x1xf32>
    %58 = vector.broadcast %57 : vector<1x8x1xf32> to vector<1x8x8xf32>
    %59 = arith.subf %55, %58 : vector<1x8x8xf32>
    %60 = math.exp %59 : vector<1x8x8xf32>
    %cst_23 = arith.constant dense<0.000000e+00> : vector<1x8xf32>
    %61 = vector.multi_reduction <add>, %60, %cst_23 [2] : vector<1x8x8xf32> to vector<1x8xf32>
    %62 = vector.shape_cast %61 : vector<1x8xf32> to vector<1x8x1xf32>
    %63 = tpu.reciprocal %62 {approx = true} : vector<1x8x1xf32> -> vector<1x8x1xf32>
    %64 = vector.broadcast %63 : vector<1x8x1xf32> to vector<1x8x8xf32>
    %65 = arith.mulf %60, %64 : vector<1x8x8xf32>
    %66 = arith.truncf %65 : vector<1x8x8xf32> to vector<1x8x8xbf16>
    "tpu.trace_start"() <{level = 10 : i32, message = "bqk,bkd->bqd"}> : () -> ()
    %cst_24 = arith.constant dense<0.000000e+00> : vector<1x8x8xf32>
    %67 = tpu.matmul %66, %50, %cst_24 {dimension_numbers = #tpu.dot_dimension_numbers<[2], [1], [1], [2], [0, 0, 0, 1, 1, 2], [0], [0]>} : vector<1x8x8xbf16>, vector<1x8x8xbf16>, vector<1x8x8xf32> -> vector<1x8x8xf32>
    "tpu.trace_stop"() : () -> ()
    %68 = vector.shape_cast %67 : vector<1x8x8xf32> to vector<8x8xf32>
    %c0_25 = arith.constant 0 : index
    %c8 = arith.constant 8 : index
    %69 = vector.load %arg27[%c0_25, %c8] : memref<8x16xf32, #tpu.memory_space<vmem>>, vector<8x8xf32>
    tpu.vector_store %arg27[%c0_25, %c8], %68 {strides = array<i32>} : memref<8x16xf32, #tpu.memory_space<vmem>>, vector<8x8xf32>,
    %c0_26 = arith.constant 0 : index
    %c0_27 = arith.constant 0 : index
    %70 = vector.load %arg27[%c0_26, %c0_27] : memref<8x16xf32, #tpu.memory_space<vmem>>, vector<8x16xf32>
    %71 = arith.truncf %70 : vector<8x16xf32> to vector<8x16xbf16>
    %c0_28 = arith.constant 0 : index
    %c0_29 = arith.constant 0 : index
    %c0_30 = arith.constant 0 : index
    %72 = vector.load %arg7[%c0_28, %c0_29, %c0_30] : memref<1x16x32xbf16, #tpu.memory_space<vmem>>, vector<1x16x32xbf16>
    %73 = vector.shape_cast %72 : vector<1x16x32xbf16> to vector<16x32xbf16>
    %cst_31 = arith.constant dense<0.000000e+00> : vector<8x32xf32>
    %74 = tpu.matmul %71, %73, %cst_31 {dimension_numbers = #tpu.dot_dimension_numbers<[1], [0], [0], [1], [0, 0, 1, 1], [], []>} : vector<8x16xbf16>, vector<16x32xbf16>, vector<8x32xf32> -> vector<8x32xf32>
    %c0_32 = arith.constant 0 : index
    %c0_33 = arith.constant 0 : index
    %c0_34 = arith.constant 0 : index
    %75 = vector.load %arg8[%c0_32, %c0_33, %c0_34] : memref<1x1x32xf32, #tpu.memory_space<vmem>>, vector<1x1x32xf32>
    %76 = vector.shape_cast %75 : vector<1x1x32xf32> to vector<1x32xf32>
    %77 = vector.broadcast %76 : vector<1x32xf32> to vector<8x32xf32>
    %78 = arith.addf %74, %77 : vector<8x32xf32>
    %79 = arith.addf %78, %3 : vector<8x32xf32>
    %cst_35 = arith.constant dense<0.000000e+00> : vector<8xf32>
    %80 = vector.multi_reduction <add>, %79, %cst_35 [1] : vector<8x32xf32> to vector<8xf32>
    %81 = vector.shape_cast %80 : vector<8xf32> to vector<8x1xf32>
    %cst_36 = arith.constant 3.200000e+01 : f32
    %82 = vector.broadcast %cst_36 : f32 to vector<8x1xf32>
    %83 = arith.divf %81, %82 : vector<8x1xf32>
    %84 = arith.mulf %79, %79 : vector<8x32xf32>
    %cst_37 = arith.constant dense<0.000000e+00> : vector<8xf32>
    %85 = vector.multi_reduction <add>, %84, %cst_37 [1] : vector<8x32xf32> to vector<8xf32>
    %86 = vector.shape_cast %85 : vector<8xf32> to vector<8x1xf32>
    %cst_38 = arith.constant 3.200000e+01 : f32
    %87 = vector.broadcast %cst_38 : f32 to vector<8x1xf32>
    %88 = arith.divf %86, %87 : vector<8x1xf32>
    %89 = arith.mulf %83, %83 : vector<8x1xf32>
    %90 = arith.subf %88, %89 : vector<8x1xf32>
    %91 = vector.broadcast %83 : vector<8x1xf32> to vector<8x32xf32>
    %92 = arith.subf %79, %91 : vector<8x32xf32>
    %cst_39 = arith.constant 9.99999974E-6 : f32
    %93 = vector.broadcast %cst_39 : f32 to vector<8x1xf32>
    %94 = arith.addf %90, %93 : vector<8x1xf32>
    %95 = math.rsqrt %94 : vector<8x1xf32>
    %96 = vector.broadcast %95 : vector<8x1xf32> to vector<8x32xf32>
    %97 = arith.mulf %92, %96 : vector<8x32xf32>
    %c0_40 = arith.constant 0 : index
    %c0_41 = arith.constant 0 : index
    %c0_42 = arith.constant 0 : index
    %98 = vector.load %arg9[%c0_40, %c0_41, %c0_42] : memref<1x1x32xf32, #tpu.memory_space<vmem>>, vector<1x1x32xf32>
    %99 = vector.shape_cast %98 : vector<1x1x32xf32> to vector<1x32xf32>
    %100 = vector.broadcast %99 : vector<1x32xf32> to vector<8x32xf32>
    %101 = arith.mulf %97, %100 : vector<8x32xf32>
    %c0_43 = arith.constant 0 : index
    %c0_44 = arith.constant 0 : index
    %c0_45 = arith.constant 0 : index
    %102 = vector.load %arg10[%c0_43, %c0_44, %c0_45] : memref<1x1x32xf32, #tpu.memory_space<vmem>>, vector<1x1x32xf32>
    %103 = vector.shape_cast %102 : vector<1x1x32xf32> to vector<1x32xf32>
    %104 = vector.broadcast %103 : vector<1x32xf32> to vector<8x32xf32>
    %105 = arith.addf %101, %104 : vector<8x32xf32>
    %106 = vector.broadcast %4 : vector<8x1xf32> to vector<8x32xf32>
    %107 = arith.mulf %105, %106 : vector<8x32xf32>
    %108 = arith.truncf %107 : vector<8x32xf32> to vector<8x32xbf16>
    %c0_46 = arith.constant 0 : index
    %c0_47 = arith.constant 0 : index
    %c0_48 = arith.constant 0 : index
    %109 = vector.load %arg11[%c0_46, %c0_47, %c0_48] : memref<1x32x64xbf16, #tpu.memory_space<vmem>>, vector<1x32x64xbf16>
    %110 = vector.shape_cast %109 : vector<1x32x64xbf16> to vector<32x64xbf16>
    %cst_49 = arith.constant dense<0.000000e+00> : vector<8x64xf32>
    %111 = tpu.matmul %108, %110, %cst_49 {dimension_numbers = #tpu.dot_dimension_numbers<[1], [0], [0], [1], [0, 0, 1, 1], [], []>} : vector<8x32xbf16>, vector<32x64xbf16>, vector<8x64xf32> -> vector<8x64xf32>
    %c0_50 = arith.constant 0 : index
    %c0_51 = arith.constant 0 : index
    %c0_52 = arith.constant 0 : index
    %112 = vector.load %arg12[%c0_50, %c0_51, %c0_52] : memref<1x1x64xf32, #tpu.memory_space<vmem>>, vector<1x1x64xf32>
    %113 = vector.shape_cast %112 : vector<1x1x64xf32> to vector<1x64xf32>
    %114 = vector.broadcast %113 : vector<1x64xf32> to vector<8x64xf32>
    %115 = arith.addf %111, %114 : vector<8x64xf32>
    %cst_53 = arith.constant 0.000000e+00 : f32
    %116 = vector.broadcast %cst_53 : f32 to vector<8x64xf32>
    %117 = arith.maximumf %115, %116 : vector<8x64xf32>
    %118 = arith.truncf %117 : vector<8x64xf32> to vector<8x64xbf16>
    %c0_54 = arith.constant 0 : index
    %c0_55 = arith.constant 0 : index
    %c0_56 = arith.constant 0 : index
    %119 = vector.load %arg13[%c0_54, %c0_55, %c0_56] : memref<1x64x32xbf16, #tpu.memory_space<vmem>>, vector<1x64x32xbf16>
    %120 = vector.shape_cast %119 : vector<1x64x32xbf16> to vector<64x32xbf16>
    %cst_57 = arith.constant dense<0.000000e+00> : vector<8x32xf32>
    %121 = tpu.matmul %118, %120, %cst_57 {dimension_numbers = #tpu.dot_dimension_numbers<[1], [0], [0], [1], [0, 0, 1, 1], [], []>} : vector<8x64xbf16>, vector<64x32xbf16>, vector<8x32xf32> -> vector<8x32xf32>
    %c0_58 = arith.constant 0 : index
    %c0_59 = arith.constant 0 : index
    %c0_60 = arith.constant 0 : index
    %122 = vector.load %arg14[%c0_58, %c0_59, %c0_60] : memref<1x1x32xf32, #tpu.memory_space<vmem>>, vector<1x1x32xf32>
    %123 = vector.shape_cast %122 : vector<1x1x32xf32> to vector<1x32xf32>
    %124 = vector.broadcast %123 : vector<1x32xf32> to vector<8x32xf32>
    %125 = arith.addf %121, %124 : vector<8x32xf32>
    %126 = arith.addf %125, %107 : vector<8x32xf32>
    %cst_61 = arith.constant dense<0.000000e+00> : vector<8xf32>
    %127 = vector.multi_reduction <add>, %126, %cst_61 [1] : vector<8x32xf32> to vector<8xf32>
    %128 = vector.shape_cast %127 : vector<8xf32> to vector<8x1xf32>
    %cst_62 = arith.constant 3.200000e+01 : f32
    %129 = vector.broadcast %cst_62 : f32 to vector<8x1xf32>
    %130 = arith.divf %128, %129 : vector<8x1xf32>
    %131 = arith.mulf %126, %126 : vector<8x32xf32>
    %cst_63 = arith.constant dense<0.000000e+00> : vector<8xf32>
    %132 = vector.multi_reduction <add>, %131, %cst_63 [1] : vector<8x32xf32> to vector<8xf32>
    %133 = vector.shape_cast %132 : vector<8xf32> to vector<8x1xf32>
    %cst_64 = arith.constant 3.200000e+01 : f32
    %134 = vector.broadcast %cst_64 : f32 to vector<8x1xf32>
    %135 = arith.divf %133, %134 : vector<8x1xf32>
    %136 = arith.mulf %130, %130 : vector<8x1xf32>
    %137 = arith.subf %135, %136 : vector<8x1xf32>
    %138 = vector.broadcast %130 : vector<8x1xf32> to vector<8x32xf32>
    %139 = arith.subf %126, %138 : vector<8x32xf32>
    %cst_65 = arith.constant 9.99999974E-6 : f32
    %140 = vector.broadcast %cst_65 : f32 to vector<8x1xf32>
    %141 = arith.addf %137, %140 : vector<8x1xf32>
    %142 = math.rsqrt %141 : vector<8x1xf32>
    %143 = vector.broadcast %142 : vector<8x1xf32> to vector<8x32xf32>
    %144 = arith.mulf %139, %143 : vector<8x32xf32>
    %c0_66 = arith.constant 0 : index
    %c0_67 = arith.constant 0 : index
    %c0_68 = arith.constant 0 : index
    %145 = vector.load %arg15[%c0_66, %c0_67, %c0_68] : memref<1x1x32xf32, #tpu.memory_space<vmem>>, vector<1x1x32xf32>
    %146 = vector.shape_cast %145 : vector<1x1x32xf32> to vector<1x32xf32>
    %147 = vector.broadcast %146 : vector<1x32xf32> to vector<8x32xf32>
    %148 = arith.mulf %144, %147 : vector<8x32xf32>
    %c0_69 = arith.constant 0 : index
    %c0_70 = arith.constant 0 : index
    %c0_71 = arith.constant 0 : index
    %149 = vector.load %arg16[%c0_69, %c0_70, %c0_71] : memref<1x1x32xf32, #tpu.memory_space<vmem>>, vector<1x1x32xf32>
    %150 = vector.shape_cast %149 : vector<1x1x32xf32> to vector<1x32xf32>
    %151 = vector.broadcast %150 : vector<1x32xf32> to vector<8x32xf32>
    %152 = arith.addf %148, %151 : vector<8x32xf32>
    %153 = vector.broadcast %4 : vector<8x1xf32> to vector<8x32xf32>
    %154 = arith.mulf %152, %153 : vector<8x32xf32>
    %c0_72 = arith.constant 0 : index
    %c0_73 = arith.constant 0 : index
    %155 = vector.load %arg26[%c0_72, %c0_73] : memref<8x32xf32, #tpu.memory_space<vmem>>, vector<8x32xf32>
    tpu.vector_store %arg26[%c0_72, %c0_73], %154 {strides = array<i32>} : memref<8x32xf32, #tpu.memory_space<vmem>>, vector<8x32xf32>,
    %c1_i32 = arith.constant 1 : i32
    %156 = arith.cmpi eq, %arg1, %c1_i32 : i32
    %157 = arith.extui %156 : i1 to i32
    %c0_i32_74 = arith.constant 0 : i32
    %158 = arith.cmpi ne, %157, %c0_i32_74 : i32
    scf.if %158 {
      %159 = arith.truncf %154 : vector<8x32xf32> to vector<8x32xbf16>
      %c0_75 = arith.constant 0 : index
      %c0_76 = arith.constant 0 : index
      %160 = vector.load %arg17[%c0_75, %c0_76] : memref<32x640xbf16, #tpu.memory_space<vmem>>, vector<32x640xbf16>
      %cst_77 = arith.constant dense<0.000000e+00> : vector<8x640xf32>
      %161 = tpu.matmul %159, %160, %cst_77 {dimension_numbers = #tpu.dot_dimension_numbers<[1], [0], [0], [1], [0, 0, 1, 1], [], []>} : vector<8x32xbf16>, vector<32x640xbf16>, vector<8x640xf32> -> vector<8x640xf32>
      %c0_78 = arith.constant 0 : index
      %c0_79 = arith.constant 0 : index
      %162 = vector.load %arg18[%c0_78, %c0_79] : memref<1x640xf32, #tpu.memory_space<vmem>>, vector<1x640xf32>
      %163 = vector.broadcast %162 : vector<1x640xf32> to vector<8x640xf32>
      %164 = arith.addf %161, %163 : vector<8x640xf32>
      %cst_80 = arith.constant 0.000000e+00 : f32
      %165 = vector.broadcast %cst_80 : f32 to vector<8x640xf32>
      %166 = arith.maximumf %164, %165 : vector<8x640xf32>
      %167 = arith.truncf %166 : vector<8x640xf32> to vector<8x640xbf16>
      %c0_81 = arith.constant 0 : index
      %c0_82 = arith.constant 0 : index
      %168 = vector.load %arg19[%c0_81, %c0_82] : memref<640x32xbf16, #tpu.memory_space<vmem>>, vector<640x32xbf16>
      %cst_83 = arith.constant dense<0.000000e+00> : vector<8x32xf32>
      %169 = tpu.matmul %167, %168, %cst_83 {dimension_numbers = #tpu.dot_dimension_numbers<[1], [0], [0], [1], [0, 0, 1, 1], [], []>} : vector<8x640xbf16>, vector<640x32xbf16>, vector<8x32xf32> -> vector<8x32xf32>
      %c0_84 = arith.constant 0 : index
      %c0_85 = arith.constant 0 : index
      %170 = vector.load %arg20[%c0_84, %c0_85] : memref<1x32xf32, #tpu.memory_space<vmem>>, vector<1x32xf32>
      %171 = vector.broadcast %170 : vector<1x32xf32> to vector<8x32xf32>
      %172 = arith.addf %169, %171 : vector<8x32xf32>
      %cst_86 = arith.constant 0.000000e+00 : f32
      %173 = vector.broadcast %cst_86 : f32 to vector<8x32xf32>
      %174 = arith.maximumf %172, %173 : vector<8x32xf32>
      %175 = arith.truncf %174 : vector<8x32xf32> to vector<8x32xbf16>
      %c0_87 = arith.constant 0 : index
      %c0_88 = arith.constant 0 : index
      %176 = vector.load %arg21[%c0_87, %c0_88] : memref<32x512xbf16, #tpu.memory_space<vmem>>, vector<32x512xbf16>
      %cst_89 = arith.constant dense<0.000000e+00> : vector<8x512xf32>
      %177 = tpu.matmul %175, %176, %cst_89 {dimension_numbers = #tpu.dot_dimension_numbers<[1], [0], [0], [1], [0, 0, 1, 1], [], []>} : vector<8x32xbf16>, vector<32x512xbf16>, vector<8x512xf32> -> vector<8x512xf32>
      %c0_90 = arith.constant 0 : index
      %c0_91 = arith.constant 0 : index
      %178 = vector.load %arg22[%c0_90, %c0_91] : memref<1x512xf32, #tpu.memory_space<vmem>>, vector<1x512xf32>
      %179 = vector.broadcast %178 : vector<1x512xf32> to vector<8x512xf32>
      %180 = arith.addf %177, %179 : vector<8x512xf32>
      %cst_92 = arith.constant 0.000000e+00 : f32
      %181 = vector.broadcast %cst_92 : f32 to vector<8x512xf32>
      %182 = arith.maximumf %180, %181 : vector<8x512xf32>
      %183 = arith.truncf %182 : vector<8x512xf32> to vector<8x512xbf16>
      %c0_93 = arith.constant 0 : index
      %c0_94 = arith.constant 0 : index
      %184 = vector.load %arg23[%c0_93, %c0_94] : memref<512x128xbf16, #tpu.memory_space<vmem>>, vector<512x128xbf16>
      %cst_95 = arith.constant dense<0.000000e+00> : vector<8x128xf32>
      %185 = tpu.matmul %183, %184, %cst_95 {dimension_numbers = #tpu.dot_dimension_numbers<[1], [0], [0], [1], [0, 0, 1, 1], [], []>} : vector<8x512xbf16>, vector<512x128xbf16>, vector<8x128xf32> -> vector<8x128xf32>
      %c0_96 = arith.constant 0 : index
      %c0_97 = arith.constant 0 : index
      %186 = vector.load %arg24[%c0_96, %c0_97] : memref<1x128xf32, #tpu.memory_space<vmem>>, vector<1x128xf32>
      %187 = vector.broadcast %186 : vector<1x128xf32> to vector<8x128xf32>
      %188 = arith.addf %185, %187 : vector<8x128xf32>
      %c0_98 = arith.constant 0 : index
      %c0_99 = arith.constant 0 : index
      %189 = vector.load %arg25[%c0_98, %c0_99] : memref<8x128xf32, #tpu.memory_space<vmem>>, vector<8x128xf32>
      tpu.vector_store %arg25[%c0_98, %c0_99], %188 {strides = array<i32>} : memref<8x128xf32, #tpu.memory_space<vmem>>, vector<8x128xf32>,
    } else {
    }
    return
  }
  func.func @transform_0(%arg0: i32, %arg1: i32) -> (i32, i32) {
    %c0_i32 = arith.constant 0 : i32
    %c0_i32_0 = arith.constant 0 : i32
    return %arg0, %c0_i32 : i32, i32
  }
  func.func @transform_1(%arg0: i32, %arg1: i32) -> (i32, i32, i32) {
    %c0_i32 = arith.constant 0 : i32
    %c0_i32_0 = arith.constant 0 : i32
    %c0_i32_1 = arith.constant 0 : i32
    return %arg0, %c0_i32, %c0_i32_0 : i32, i32, i32
  }
  func.func @transform_2(%arg0: i32, %arg1: i32) -> (i32, i32) {
    %c0_i32 = arith.constant 0 : i32
    %c0_i32_0 = arith.constant 0 : i32
    return %arg0, %c0_i32 : i32, i32
  }
  func.func @transform_3(%arg0: i32, %arg1: i32) -> (i32, i32, i32) {
    %c0_i32 = arith.constant 0 : i32
    %c0_i32_0 = arith.constant 0 : i32
    %c0_i32_1 = arith.constant 0 : i32
    return %arg1, %c0_i32, %c0_i32_0 : i32, i32, i32
  }
  func.func @transform_4(%arg0: i32, %arg1: i32) -> (i32, i32, i32) {
    %c0_i32 = arith.constant 0 : i32
    %c0_i32_0 = arith.constant 0 : i32
    %c0_i32_1 = arith.constant 0 : i32
    return %arg1, %c0_i32, %c0_i32_0 : i32, i32, i32
  }
  func.func @transform_5(%arg0: i32, %arg1: i32) -> (i32, i32, i32) {
    %c0_i32 = arith.constant 0 : i32
    %c0_i32_0 = arith.constant 0 : i32
    %c0_i32_1 = arith.constant 0 : i32
    return %arg1, %c0_i32, %c0_i32_0 : i32, i32, i32
  }
  func.func @transform_6(%arg0: i32, %arg1: i32) -> (i32, i32, i32) {
    %c0_i32 = arith.constant 0 : i32
    %c0_i32_0 = arith.constant 0 : i32
    %c0_i32_1 = arith.constant 0 : i32
    return %arg1, %c0_i32, %c0_i32_0 : i32, i32, i32
  }
  func.func @transform_7(%arg0: i32, %arg1: i32) -> (i32, i32, i32) {
    %c0_i32 = arith.constant 0 : i32
    %c0_i32_0 = arith.constant 0 : i32
    %c0_i32_1 = arith.constant 0 : i32
    return %arg1, %c0_i32, %c0_i32_0 : i32, i32, i32
  }
  func.func @transform_8(%arg0: i32, %arg1: i32) -> (i32, i32, i32) {
    %c0_i32 = arith.constant 0 : i32
    %c0_i32_0 = arith.constant 0 : i32
    %c0_i32_1 = arith.constant 0 : i32
    return %arg1, %c0_i32, %c0_i32_0 : i32, i32, i32
  }
  func.func @transform_9(%arg0: i32, %arg1: i32) -> (i32, i32, i32) {
    %c0_i32 = arith.constant 0 : i32
    %c0_i32_0 = arith.constant 0 : i32
    %c0_i32_1 = arith.constant 0 : i32
    return %arg1, %c0_i32, %c0_i32_0 : i32, i32, i32
  }
  func.func @transform_10(%arg0: i32, %arg1: i32) -> (i32, i32, i32) {
    %c0_i32 = arith.constant 0 : i32
    %c0_i32_0 = arith.constant 0 : i32
    %c0_i32_1 = arith.constant 0 : i32
    return %arg1, %c0_i32, %c0_i32_0 : i32, i32, i32
  }
  func.func @transform_11(%arg0: i32, %arg1: i32) -> (i32, i32, i32) {
    %c0_i32 = arith.constant 0 : i32
    %c0_i32_0 = arith.constant 0 : i32
    %c0_i32_1 = arith.constant 0 : i32
    return %arg1, %c0_i32, %c0_i32_0 : i32, i32, i32
  }
  func.func @transform_12(%arg0: i32, %arg1: i32) -> (i32, i32, i32) {
    %c0_i32 = arith.constant 0 : i32
    %c0_i32_0 = arith.constant 0 : i32
    %c0_i32_1 = arith.constant 0 : i32
    return %arg1, %c0_i32, %c0_i32_0 : i32, i32, i32
  }
  func.func @transform_13(%arg0: i32, %arg1: i32) -> (i32, i32, i32) {
    %c0_i32 = arith.constant 0 : i32
    %c0_i32_0 = arith.constant 0 : i32
    %c0_i32_1 = arith.constant 0 : i32
    return %arg1, %c0_i32, %c0_i32_0 : i32, i32, i32
  }
  func.func @transform_14(%arg0: i32, %arg1: i32) -> (i32, i32, i32) {
    %c0_i32 = arith.constant 0 : i32
    %c0_i32_0 = arith.constant 0 : i32
    %c0_i32_1 = arith.constant 0 : i32
    return %arg1, %c0_i32, %c0_i32_0 : i32, i32, i32
  }
  func.func @transform_15(%arg0: i32, %arg1: i32) -> (i32, i32) {
    %c0_i32 = arith.constant 0 : i32
    %c0_i32_0 = arith.constant 0 : i32
    %c0_i32_1 = arith.constant 0 : i32
    return %c0_i32, %c0_i32_0 : i32, i32
  }
  func.func @transform_16(%arg0: i32, %arg1: i32) -> (i32, i32) {
    %c0_i32 = arith.constant 0 : i32
    %c0_i32_0 = arith.constant 0 : i32
    %c0_i32_1 = arith.constant 0 : i32
    return %c0_i32, %c0_i32_0 : i32, i32
  }
  func.func @transform_17(%arg0: i32, %arg1: i32) -> (i32, i32) {
    %c0_i32 = arith.constant 0 : i32
    %c0_i32_0 = arith.constant 0 : i32
    %c0_i32_1 = arith.constant 0 : i32
    return %c0_i32, %c0_i32_0 : i32, i32
  }
  func.func @transform_18(%arg0: i32, %arg1: i32) -> (i32, i32) {
    %c0_i32 = arith.constant 0 : i32
    %c0_i32_0 = arith.constant 0 : i32
    %c0_i32_1 = arith.constant 0 : i32
    return %c0_i32, %c0_i32_0 : i32, i32
  }
  func.func @transform_19(%arg0: i32, %arg1: i32) -> (i32, i32) {
    %c0_i32 = arith.constant 0 : i32
    %c0_i32_0 = arith.constant 0 : i32
    %c0_i32_1 = arith.constant 0 : i32
    return %c0_i32, %c0_i32_0 : i32, i32
  }
  func.func @transform_20(%arg0: i32, %arg1: i32) -> (i32, i32) {
    %c0_i32 = arith.constant 0 : i32
    %c0_i32_0 = arith.constant 0 : i32
    %c0_i32_1 = arith.constant 0 : i32
    return %c0_i32, %c0_i32_0 : i32, i32
  }
  func.func @transform_21(%arg0: i32, %arg1: i32) -> (i32, i32) {
    %c0_i32 = arith.constant 0 : i32
    %c0_i32_0 = arith.constant 0 : i32
    %c0_i32_1 = arith.constant 0 : i32
    return %c0_i32, %c0_i32_0 : i32, i32
  }
  func.func @transform_22(%arg0: i32, %arg1: i32) -> (i32, i32) {
    %c0_i32 = arith.constant 0 : i32
    %c0_i32_0 = arith.constant 0 : i32
    %c0_i32_1 = arith.constant 0 : i32
    return %c0_i32, %c0_i32_0 : i32, i32
  }
  func.func @transform_23(%arg0: i32, %arg1: i32) -> (i32, i32) {
    %c0_i32 = arith.constant 0 : i32
    %c0_i32_0 = arith.constant 0 : i32
    return %arg0, %c0_i32 : i32, i32
  }
}

</mosaic_0001>

<bundles_post_ra>
// kernel: tpu_custom_call.1
= control target key start
LH: loop header
LB: loop body
LE: loop exit
PB: predicated region body
PF: predicated region fallthrough
CT: control target
= control target key end

     0   :  { %s5119_s0 = inlined_call_operand.vmem [shape: f32[16,32], index: 0, kind: input, shape index: {}]   ;;  %s5120_s1 = inlined_call_operand.hbm [shape: f32[2,1,8], index: 1, kind: input, shape index: {}]   ;;  %s5121_s2 = inlined_call_operand.vmem [shape: f32[16,1], index: 2, kind: input, shape index: {}]   ;;  %s5122_s3 = inlined_call_operand.vmem [shape: bf16[2,32,48], index: 3, kind: input, shape index: {}]   ;;  %s5123_s4 = inlined_call_operand.hbm [shape: f32[2,1,48], index: 4, kind: input, shape index: {}]   ;;  %s5124_s5 = inlined_call_operand.hbm [shape: bf16[2,16,32], index: 5, kind: input, shape index: {}]   ;;  %s5125_s6 = inlined_call_operand.hbm [shape: f32[2,1,32], index: 6, kind: input, shape index: {}]   ;;  %s5126_s7 = inlined_call_operand.hbm [shape: f32[2,1,32], index: 7, kind: input, shape index: {}]   ;;  %s5127_s8 = inlined_call_operand.hbm [shape: f32[2,1,32], index: 8, kind: input, shape index: {}]   ;;  %s5128_s9 = inlined_call_operand.hbm [shape: bf16[2,32,64], index: 9, kind: input, shape index: {}]   ;;  %s5129_s10 = inlined_call_operand.hbm [shape: f32[2,1,64], index: 10, kind: input, shape index: {}]   ;;  %s5130_s11 = inlined_call_operand.vmem [shape: bf16[2,64,32], index: 11, kind: input, shape index: {}]   ;;  %s5131_s12 = inlined_call_operand.hbm [shape: f32[2,1,32], index: 12, kind: input, shape index: {}]   ;;  %s5132_s13 = inlined_call_operand.hbm [shape: f32[2,1,32], index: 13, kind: input, shape index: {}]   ;;  %s5133_s14 = inlined_call_operand.hbm [shape: f32[2,1,32], index: 14, kind: input, shape index: {}]   ;;  %s5134_s15 = inlined_call_operand.vmem [shape: bf16[32,640], index: 15, kind: input, shape index: {}]   ;;  %s5135_s16 = inlined_call_operand.hbm [shape: f32[1,640], index: 16, kind: input, shape index: {}]   ;;  %s5136_s17 = inlined_call_operand.vmem [shape: bf16[640,32], index: 17, kind: input, shape index: {}]   ;;  %s5137_s18 = inlined_call_operand.vmem [shape: f32[1,32], index: 18, kind: input, shape index: {}]   ;;  %s5138_s19 = inlined_call_operand.vmem [shape: bf16[32,512], index: 19, kind: input, shape index: {}]   ;;  %s5139_s20 = inlined_call_operand.hbm [shape: f32[1,512], index: 20, kind: input, shape index: {}]   ;;  %s5140_s21 = inlined_call_operand.vmem [shape: bf16[512,128], index: 21, kind: input, shape index: {}]   ;;  %s5141_s22 = inlined_call_operand.vmem [shape: f32[1,128], index: 22, kind: input, shape index: {}]   ;;  %s5142_s23 = inlined_call_operand.hbm [shape: f32[16,128], index: 23, kind: output, shape index: {}]  }
   0x1   :  { %5171 = sst [smem:[#allocation49_spill]] %s5119_s0 }
   0x2   :  { %5172 = sst [smem:[#allocation50_spill]] %s5120_s1 }
   0x3   :  { %5173 = sst [smem:[#allocation51_spill]] %s5121_s2 }
   0x4   :  { %5174 = sst [smem:[#allocation52_spill]] %s5122_s3 }
   0x5   :  { %5175 = sst [smem:[#allocation53_spill]] %s5123_s4 }
   0x6   :  { %5176 = sst [smem:[#allocation54_spill]] %s5124_s5 }
   0x7   :  { %5177 = sst [smem:[#allocation55_spill]] %s5125_s6 }
   0x8   :  { %5178 = sst [smem:[#allocation56_spill]] %s5126_s7 }
   0x9   :  { %5179 = sst [smem:[#allocation57_spill]] %s5127_s8 }
   0xa   :  { %5180 = sst [smem:[#allocation58_spill]] %s5128_s9 }
   0xb   :  { %5181 = sst [smem:[#allocation59_spill]] %s5129_s10 }
   0xc   :  { %5182 = sst [smem:[#allocation60_spill]] %s5130_s11 }
   0xd   :  { %5183 = sst [smem:[#allocation61_spill]] %s5131_s12 }
   0xe   :  { %5184 = sst [smem:[#allocation62_spill]] %s5132_s13 }
   0xf   :  { %5185 = sst [smem:[#allocation63_spill]] %s5133_s14 }
  0x10   :  { %5186 = sst [smem:[#allocation64_spill]] %s5134_s15 }
  0x11   :  { %5187 = sst [smem:[#allocation65_spill]] %s5135_s16 }
  0x12   :  { %5188 = sst [smem:[#allocation66_spill]] %s5136_s17 }
  0x13   :  { %5189 = sst [smem:[#allocation67_spill]] %s5137_s18 }
  0x14   :  { %5190 = sst [smem:[#allocation68_spill]] %s5138_s19 }
  0x15   :  { %5191 = sst [smem:[#allocation69_spill]] %s5139_s20 }
  0x16   :  { %5192 = sst [smem:[#allocation70_spill]] %s5140_s21 }
  0x17   :  { %5193 = sst [smem:[#allocation71_spill]] %s5141_s22 }
  0x18   :  { %5194 = sst [smem:[#allocation72_spill]] %s5142_s23 }
  0x19   :  { %28 = vsyncpa [#allocation5], 0 }
  0x1a   :  { %30 = vsyncpa [#allocation5 + $0x1], 0 }
  0x1b   :  { %31 = vsyncpa [#allocation8], 0 }
  0x1c   :  { %33 = vsyncpa [#allocation8 + $0x1], 0 }
  0x1d   :  { %34 = vsyncpa [#allocation11], 0 }
  0x1e   :  { %36 = vsyncpa [#allocation11 + $0x1], 0 }
  0x1f   :  { %37 = vsyncpa [#allocation14], 0 }
  0x20   :  { %39 = vsyncpa [#allocation14 + $0x1], 0 }
  0x21   :  { %40 = vsyncpa [#allocation17], 0 }
  0x22   :  { %42 = vsyncpa [#allocation17 + $0x1], 0 }
  0x23   :  { %43 = vsyncpa [#allocation20], 0 }
  0x24   :  { %45 = vsyncpa [#allocation20 + $0x1], 0 }
  0x25   :  { %46 = vsyncpa [#allocation23], 0 }
  0x26   :  { %47 = vsyncpa [#allocation6], 0 }
  0x27   :  { %49 = vsyncpa [#allocation6 + $0x1], 0  ;;  %s4328_s4 = smov 0   ;;  %s4330_s30 = smov 0  }
  0x28   :  { %s4332_s24 = smov 0   ;;  %s4334_s25 = smov 0  }
  0x29   :  { %s4336_s5 = smov 0   ;;  %s4338_s1 = smov 0  }
  0x2a   :  { %s4340_s26 = smov 0   ;;  %s4342_s2 = smov 0  }
  0x2b   :  { %s4344_s6 = smov 0   ;;  %s4346_s27 = smov 0  }
  0x2c   :  { %s4348_s7 = smov 0  }
  0x2d LB: > { %5195 = sst [smem:[#allocation34_spill]] %s4158_s30  ;;  %s4382_s28 = sadd.s32 4294967295, %s4194_s7   ;;  %s4194_s7 = sphi %s4348_s7, %s55_s7   ;;  %s4190_s27 = sphi %s4346_s27, %s5279_s27   ;;  %s4186_s6 = sphi %s4344_s6, %s5278_s6   ;;  %s4182_s2 = sphi %s4342_s2, %s5277_s2   ;;  %s4178_s26 = sphi %s4340_s26, %s5276_s26   ;;  %s4174_s1 = sphi %s4338_s1, %s5275_s1   ;;  %s4170_s5 = sphi %s4336_s5, %s5274_s5   ;;  %s4166_s25 = sphi %s4334_s25, %s5273_s25   ;;  %s4162_s24 = sphi %s4332_s24, %s5281_s24   ;;  %s4158_s30 = sphi %s4330_s30, %s5280_s30   ;;  %s4154_s4 = sphi %s4328_s4, %s5271_s4  }
  0x2e   : > { %5196 = sst [smem:[#allocation35_spill]] %s4170_s5  ;;  %p108_p0 = scmp.eq.s32.totalorder %s4194_s7, 0 }
  0x2f   : > { %5197 = sst [smem:[#allocation36_spill]] %s4174_s1  ;;  %p5159_p1 = scmp.eq.s32.totalorder %s4382_s28, 0 }
  0x30   : > { %5198 = sst [smem:[#allocation37_spill]] %s4178_s26  ;;  %p185_p2 = scmp.ne.s32.totalorder %s4162_s24, %s4158_s30 }
  0x31   : > { %5199 = sst [smem:[#allocation38_spill]] %s4182_s2  ;;  %p191_p3 = scmp.ne.s32.totalorder %s4158_s30, %s4154_s4 }
  0x32   : > { %5200 = sst [smem:[#allocation39_spill]] %s4186_s6  ;;  %p643_p4 = scmp.eq.s32.totalorder %s4382_s28, 3 }
  0x33   : > { %5201 = sst [smem:[#allocation40_spill]] %s4190_s27  ;;  %p2904_p5 = scmp.ge.s32.totalorder %s4194_s7, 1 }
  0x34   : > { %5202 = sst [smem:[#allocation41_spill]] %s4382_s28  ;;  %p4394_p6 = por %p185_p2, %p108_p0 }
  0x35   : > { %p4400_p7 = por %p191_p3, %p5159_p1  ;;  %p656_p8 = scmp.lt.s32.totalorder %s4194_s7, 5 }
  0x36   : > { %s5206_s16 = sld [smem:[#allocation65_spill]]  ;;  %s4196_s21 = smov [#allocation22]  }
  0x37   : > { %s5204_s0 = scalar_select %p4400_p7, 1, 0 }
  0x38   : > { %p4408_p9 = pnand %p2904_p5, %p656_p8  ;;  %s673_s18 = sshll.u32 %s4196_s21, 4  ;;  %s674_s18 = int_to_ptr.vmem [resolvable:$true] %s673_s18 }
  0x39   : > { %5205 = sst [smem:[#allocation42_spill]] %s5204_s0  ;;  %p5156_p11 = scmp.lt.s32.totalorder %s4194_s7, 4 }
  0x3a   : > { %s5207_s22 = scalar_select %p4408_p9, 1, 0 }
  0x3b   : > { %p3480_p10 = pneg %p4408_p9  ;;  %s4416_s19 = sand.u32 1, %s4162_s24  }
  0x3c   : > { %s671_s4 = sshll.u32 %s5206_s16, 4  ;;  %5208 = sst [smem:[#allocation43_spill]] %s5207_s22  ;;  %s672_s4 = int_to_ptr.hbm [resolvable:$true] %s671_s4 }
  0x3d   : > { %p4420_p12 = pnand %p3480_p10, %p5159_p1  ;;  %p4428_p13 = pnand %p5156_p11, %p4394_p6 }
  0x3e   : > { %s4433_s21 = sand.u32 1, %s4194_s7   ;;  %s5211_s15 = sld [smem:[#allocation53_spill]] }
  0x3f   : > { %3483 = dma.hbm_to_vmem [thread:$0]  (!%p4420_p12), %s672_s4, 80, %s674_s18, [#allocation23]  }
  0x40   : > { %s753_s26 = scalar_lea.vmem [#allocation7], %s4416_s19  ;;  %s5155_s0 = scalar_lea.sflag [#allocation8], %s4433_s21 }
  0x41   : > { %s760_s2 = sshll.u32 %s753_s26, 4  ;;  %s5212_s4 = sld [smem:[#allocation55_spill]]  ;;  %s761_s2 = int_to_ptr.vmem [resolvable:$true] %s760_s2 }
  0x42   : > { %s5154_s26 = scalar_lea.sflag [#allocation11], %s4433_s21  ;;  %s5213_s8 = sld [smem:[#allocation57_spill]] }
  0x43   : > { %s826_s18 = scalar_lea.vmem [#allocation13], %s4416_s19  ;;  %s5214_s10 = sld [smem:[#allocation59_spill]] }
  0x44   : > { %s756_s3 = scalar_lea.hbm %s5211_s15, %s4186_s6  ;;  %s792_s15 = scalar_lea.vmem [#allocation10], %s4416_s19 }
  0x45   : > { %s758_s11 = sshll.u32 %s756_s3, 4  ;;  %s799_s17 = sshll.u32 %s792_s15, 4  ;;  %s759_s11 = int_to_ptr.hbm [resolvable:$true] %s758_s11  ;;  %s800_s17 = int_to_ptr.vmem [resolvable:$true] %s799_s17 }
  0x46   : > { %3493 = dma.hbm_to_vmem [thread:$0]  (!%p4428_p13), %s759_s11, 16, %s761_s2, %s5155_s0  }
  0x47   : > { %s795_s16 = scalar_lea.hbm %s5212_s4, %s4186_s6  ;;  %s833_s4 = sshll.u32 %s826_s18, 4  ;;  %s834_s4 = int_to_ptr.vmem [resolvable:$true] %s833_s4 }
  0x48   : > { %s797_s3 = sshll.u32 %s795_s16, 4  ;;  %s829_s30 = scalar_lea.hbm %s5213_s8, %s4186_s6  ;;  %s798_s3 = int_to_ptr.hbm [resolvable:$true] %s797_s3 }
  0x49   : > { %3499 = dma.hbm_to_vmem [thread:$0]  (!%p4428_p13), %s798_s3, 16, %s800_s17, %s5154_s26  }
  0x4a   : > { %s831_s2 = sshll.u32 %s829_s30, 4  ;;  %s5160_s16 = scalar_lea.sflag [#allocation14], %s4433_s21  ;;  %s832_s2 = int_to_ptr.hbm [resolvable:$true] %s831_s2 }
  0x4b   : > { %3505 = dma.hbm_to_vmem [thread:$0]  (!%p4428_p13), %s832_s2, 16, %s834_s4, %s5160_s16  }
  0x4c   : > { %s868_s22 = scalar_lea.hbm %s5214_s10, %s4186_s6  ;;  %s865_s3 = scalar_lea.vmem [#allocation16], %s4416_s19 }
  0x4d   : > { %s872_s11 = sshll.u32 %s865_s3, 4  ;;  %s870_s26 = sshll.u32 %s868_s22, 4  ;;  %s873_s11 = int_to_ptr.vmem [resolvable:$true] %s872_s11  ;;  %s871_s26 = int_to_ptr.hbm [resolvable:$true] %s870_s26 }
  0x4e   : > { %s5158_s30 = scalar_lea.sflag [#allocation17], %s4433_s21  ;;  %s5215_s13 = sld [smem:[#allocation62_spill]] }
  0x4f   : > { %3511 = dma.hbm_to_vmem [thread:$0]  (!%p4428_p13), %s871_s26, 16, %s873_s11, %s5158_s30  }
  0x50   : > { %s907_s15 = scalar_lea.vmem [#allocation19], %s4416_s19  ;;  %s5157_s22 = scalar_lea.sflag [#allocation20], %s4433_s21 }
  0x51   : > { %s914_s17 = sshll.u32 %s907_s15, 4  ;;  %s5216_s20 = sld [smem:[#allocation69_spill]]  ;;  %s915_s17 = int_to_ptr.vmem [resolvable:$true] %s914_s17 }
  0x52   : > { %s4197_s11 = smov [#allocation24]   ;;  %s67_s15 = sadd.s32 1, %s4190_s27 }
  0x53   : > { %s694_s18 = sshll.u32 %s4197_s11, 4  ;;  %p107_p3 = scmp.ne.s32.totalorder %s4174_s1, %s4170_s5  ;;  %s695_s18 = int_to_ptr.vmem [resolvable:$true] %s694_s18 }
  0x54   : > { %s910_s2 = scalar_lea.hbm %s5215_s13, %s4186_s6  ;;  %p113_p5 = scmp.ne.s32.totalorder %s4170_s5, %s4166_s25 }
  0x55   : > { %s912_s4 = sshll.u32 %s910_s2, 4  ;;  %s2903_s2 = sadd.s32 4294967294, %s4194_s7   ;;  %s913_s4 = int_to_ptr.hbm [resolvable:$true] %s912_s4 }
  0x56   : > { %3517 = dma.hbm_to_vmem [thread:$0]  (!%p4428_p13), %s913_s4, 16, %s915_s17, %s5157_s22  }
  0x57   : > { %s692_s3 = sshll.u32 %s5216_s20, 4  ;;  %s64_s4 = sadd.s32 1, %s4186_s6  ;;  %s693_s3 = int_to_ptr.hbm [resolvable:$true] %s692_s3 }
  0x58   : > { %3486 = dma.hbm_to_vmem [thread:$0]  (!%p4420_p12), %s693_s3, 64, %s695_s18, [#allocation23]  }
  0x59   : > { %p65_p2 = scmp.ge.s32.totalorder %s64_s4, 2  ;;  %s100_s17 = sadd.s32 1, %s4174_s1 }
  0x5a   : > { %p4505_p6 = por %p108_p0, %p107_p3  ;;  %p4514_p8 = por %p5159_p1, %p113_p5 }
  0x5b   : > { %s5283_s4 = smov (%p65_p2, %s64_s4), 0  ;;  %s5285_s15 = smov (!%p65_p2, %s67_s15), %s4190_s27 }
  0x5c   : > { %5217 = sst [smem:[#allocation44_spill]] %s5283_s4  ;;  %p69_p10 = scmp.ge.s32.totalorder %s5285_s15, 2 }
  0x5d   : > { %s175_s0 = ssub.s32 %s4186_s6, %s5283_s4  ;;  %p4522_p11 = por %p643_p4, %p107_p3 }
  0x5e   : > { %p176_p12 = scmp.eq.s32.totalorder %s175_s0, 0  ;;  %s5287_s15 = smov (%p69_p10, %s5285_s15), 0 }
  0x5f   : > { %s5220_s3 = scalar_select %p4522_p11, 1, 0 }
  0x60   : > { %5222 = sst [smem:[#allocation46_spill]] %s5287_s15  ;;  %s5223_s11 = sadd.s32 1, %s4162_s24 }
  0x61   : > { %5221 = sst [smem:[#allocation45_spill]] %s5220_s3  ;;  %s97_s22 = ssub.s32 %s4190_s27, %s5287_s15 }
  0x62   : > { %s4531_s18 = scalar_select %p176_p12, %s4162_s24, %s5223_s11  }
  0x63   : > { %p649_p0 = scmp.eq.s32.totalorder %s2903_s2, 3  ;;  %p98_p2 = scmp.eq.s32.totalorder %s97_s22, 0 }
  0x64   : > { %5224 = sst [smem:[#allocation47_spill]] %s4531_s18  ;;  %s718_s30 = sand.u32 1, %s4174_s1  }
  0x65   : > { %p4539_p1 = por %p649_p0, %p113_p5  ;;  %s5227_s13 = sld [smem:[#allocation50_spill]] }
  0x66   : > { %s4544_s16 = scalar_select %p98_p2, %s4174_s1, %s100_s17  }
  0x67   : > { %s721_s3 = scalar_lea.vmem [#allocation4], %s718_s30  ;;  %p5228_p4 = scmp.lt.s32.totalorder %s4194_s7, 4 }
  0x68   : > { %5226 = sst [smem:[#allocation48_spill]] %s4544_s16  ;;  %s728_s28 = sshll.u32 %s721_s3, 4  ;;  %s729_s28 = int_to_ptr.vmem [resolvable:$true] %s728_s28 }
  0x69   : > { %p3488_p3 = pnand %p5228_p4, %p4505_p6  ;;  %s2908_s22 = sshll.u32 %s4416_s19, 3 }
  0x6a   : > { %s3345_s2 = sshll.u32 %s4186_s6, 3  ;;  %s5229_s15 = sld [smem:[#allocation54_spill]] }
  0x6b   : > { %s724_s20 = scalar_lea.hbm %s5227_s13, %s4190_s27  ;;  %s719_s8 = scalar_lea.sflag [#allocation5], %s718_s30 }
  0x6c   : > { %s726_s4 = sshll.u32 %s724_s20, 4  ;;  %s771_s13 = scalar_lea.vmem [#allocation9], %s2908_s22  ;;  %s727_s4 = int_to_ptr.hbm [resolvable:$true] %s726_s4 }
  0x6d   : > { %3490 = dma.hbm_to_vmem [thread:$0]  (!%p3488_p3), %s727_s4, 16, %s729_s28, %s719_s8  }
  0x6e   : > { %s779_s20 = sshll.u32 %s771_s13, 4  ;;  %s4198_s23 = smov 64   ;;  %s780_s20 = int_to_ptr.vmem [resolvable:$true] %s779_s20 }
  0x6f   : > { %s4199_s3 = smov 4   ;;  %s5230_s27 = scalar_lea.sflag [#allocation8], %s4433_s21 }
  0x70   : > { %s776_s16 = scalar_lea.hbm %s5229_s15, %s3345_s2  ;;  %s5231_s17 = sld [smem:[#allocation56_spill]] }
  0x71   : > { %s777_s10 = sshll.u32 %s776_s16, 4  ;;  %s809_s4 = scalar_lea.vmem [#allocation12], %s4416_s19  ;;  %s778_s10 = int_to_ptr.hbm [resolvable:$true] %s777_s10 }
  0x72   : > { %3496 = dma.hbm_to_vmem [thread:$0]  (!%p4428_p13), %s778_s10, 128, %s780_s20, %s5230_s27, %s4198_s23, %s4198_s23, %s4199_s3  }
  0x73   : > { %s816_s16 = sshll.u32 %s809_s4, 4  ;;  %s5232_s15 = scalar_lea.sflag [#allocation11], %s4433_s21  ;;  %s817_s16 = int_to_ptr.vmem [resolvable:$true] %s816_s16 }
  0x74   : > { %s2911_s22 = sshll.u32 %s4416_s19, 4  ;;  %s3346_s27 = sshll.u32 %s4186_s6, 4 }
  0x75   : > { %s5233_s9 = sld [smem:[#allocation58_spill]]  ;;  %s844_s8 = scalar_lea.vmem [#allocation15], %s2911_s22 }
  0x76   : > { %s812_s30 = scalar_lea.hbm %s5231_s17, %s4186_s6  ;;  %s852_s10 = sshll.u32 %s844_s8, 4  ;;  %s853_s10 = int_to_ptr.vmem [resolvable:$true] %s852_s10 }
  0x77   : > { %s814_s28 = sshll.u32 %s812_s30, 4  ;;  %s5234_s13 = scalar_lea.sflag [#allocation14], %s4433_s21  ;;  %s815_s28 = int_to_ptr.hbm [resolvable:$true] %s814_s28 }
  0x78   : > { %3502 = dma.hbm_to_vmem [thread:$0]  (!%p4428_p13), %s815_s28, 16, %s817_s16, %s5232_s15  }
  0x79   : > { %s5235_s12 = sld [smem:[#allocation61_spill]]  ;;  %s890_s4 = scalar_lea.vmem [#allocation18], %s4416_s19 }
  0x7a   : > { %s897_s16 = sshll.u32 %s890_s4, 4  ;;  %s5236_s15 = scalar_lea.sflag [#allocation17], %s4433_s21  ;;  %s898_s16 = int_to_ptr.vmem [resolvable:$true] %s897_s16 }
  0x7b   : > { %s849_s18 = scalar_lea.hbm %s5233_s9, %s3346_s27  ;;  %s5237_s14 = sld [smem:[#allocation63_spill]] }
  0x7c   : > { %s850_s11 = sshll.u32 %s849_s18, 4  ;;  %s924_s18 = scalar_lea.vmem [#allocation21], %s4416_s19  ;;  %s851_s11 = int_to_ptr.hbm [resolvable:$true] %s850_s11 }
  0x7d   : > { %3508 = dma.hbm_to_vmem [thread:$0]  (!%p4428_p13), %s851_s11, 256, %s853_s10, %s5234_s13, %s4198_s23, %s4198_s23, %s4199_s3  }
  0x7e   : > { %s931_s8 = sshll.u32 %s924_s18, 4  ;;  %s5238_s23 = scalar_lea.sflag [#allocation20], %s4433_s21  ;;  %s932_s8 = int_to_ptr.vmem [resolvable:$true] %s931_s8 }
  0x7f   : > { %s893_s30 = scalar_lea.hbm %s5235_s12, %s4186_s6  ;;  %s4602_s11 = sand.u32 (!%p4408_p9), 1, %s4170_s5  }
  0x80   : > { %s895_s28 = sshll.u32 %s893_s30, 4  ;;  %940 = sbr.rel (%p4408_p9) target bundleno = 2388 (0x954), region = 112  ;;  %s896_s28 = int_to_ptr.hbm [resolvable:$true] %s895_s28 }
  0x81   : > { %3514 = dma.hbm_to_vmem [thread:$0]  (!%p4428_p13), %s896_s28, 16, %s898_s16, %s5236_s15  }
  0x82   : > { %s927_s2 = scalar_lea.hbm %s5237_s14, %s4186_s6  ;;  %s943_s10 = scalar_lea.sflag (!%p4408_p9), [#allocation5], %s4602_s11 }
  0x83   : > { %s929_s1 = sshll.u32 %s927_s2, 4  ;;  %s930_s1 = int_to_ptr.hbm [resolvable:$true] %s929_s1 }
  0x84   : > { %3520 = dma.hbm_to_vmem [thread:$0]  (!%p4428_p13), %s930_s1, 16, %s932_s8, %s5238_s23  }
  0x85   : > { %4121 = dma.done.wait (%p4514_p8), %s943_s10, 16  }
  0x86   : > { %4123 = vsyncadd (%p4514_p8), %s943_s10, 4294967280  ;;  %s5240_s19 = sld [smem:[#allocation41_spill]] }
  0x87   : > { %s5241_s29 = sld [smem:[#allocation34_spill]] }
  0x8c   : > { %s951_s20 = sand.u32 1, %s5240_s19  }
  0x8d   : > { %s4612_s17 = sand.u32 1, %s5241_s29   ;;  %s952_s30 = scalar_lea.sflag [#allocation8], %s951_s20 }
  0x8e   : > { %4125 = dma.done.wait (%p4400_p7), %s952_s30, 144  }
  0x8f   : > { %4127 = vsyncadd (%p4400_p7), %s952_s30, 4294967152  ;;  %s2915_s4 = sshll.u32 %s4612_s17, 3  ;;  %s971_s16 = scalar_lea.sflag [#allocation11], %s951_s20 }
  0x90   : > { %s4620_s26 = scalar_lea.vmem [#allocation9], %s2915_s4 }
  0x91   : > { %4129 = dma.done.wait (%p4400_p7), %s971_s16, 32  }
  0x92   : > { %4131 = vsyncadd (%p4400_p7), %s971_s16, 4294967264  ;;  %s989_s27 = scalar_lea.sflag [#allocation14], %s951_s20 }
  0x93   : > { %4133 = dma.done.wait (%p4400_p7), %s989_s27, 272  }
  0x94   : > { %4135 = vsyncadd (%p4400_p7), %s989_s27, 4294967024  ;;  %s2916_s1 = sshll.u32 %s4612_s17, 4  ;;  %s1008_s8 = scalar_lea.sflag [#allocation17], %s951_s20 }
  0x95   : > { %s4634_s18 = scalar_lea.vmem [#allocation15], %s2916_s1 }
  0x96   : > { %4137 = dma.done.wait (%p4400_p7), %s1008_s8, 32  }
  0x97   : > { %4139 = vsyncadd (%p4400_p7), %s1008_s8, 4294967264  ;;  %s1026_s10 = scalar_lea.sflag [#allocation20], %s951_s20 }
  0x98   : > { %4141 = dma.done.wait (%p4400_p7), %s1026_s10, 32  }
  0x99   : > { %4143 = vsyncadd (%p4400_p7), %s1026_s10, 4294967264  ;;  %p5243_p9 = scmp.eq.s32.totalorder %s5240_s19, 0 }
  0x9b   : > { %4145 = dma.done.wait (%p5243_p9), [#allocation23], 144   ;;  %p5244_p13 = pmov %p5243_p9 }
  0x9c   : > { %s5245_s4 = sld [smem:[#allocation38_spill]]  ;;  %s2919_s20 = sshll.u32 %s4602_s11, 3 }
  0x9d   : > { %4147 = vsyncadd (%p5244_p13), [#allocation23], 4294967152  ;;  %s5246_s16 = sld [smem:[#allocation37_spill]] }
  0x9e   : > { %s5247_s10 = sld [smem:[#allocation49_spill]] }
  0x9f   : > { %s5248_s23 = sld [smem:[#allocation51_spill]] }
  0xa0   : > { %s5249_s28 = sld [smem:[#allocation52_spill]] }
  0xa1   : > { %s5250_s6 = sld [smem:[#allocation60_spill]] }
  0xa2   : > { %p1170_p5 = scmp.lt.s32.totalorder %s5245_s4, 1 }
  0xa3   : > { %p1178_p6 = scmp.lt.s32.totalorder %s5246_s16, 1  ;;  %p2926_p7 = scmp.ne.s32.totalorder %s5246_s16, 0 }
  0xa4   : > { %s5289_s4 = smov (!%p1170_p5, %s5245_s4), 1 }
  0xa5   : > { %s1179_s27 = scalar_select %p1178_p6, %s5246_s16, 1 }
  0xa6   : > { %s2920_s21 = sshll.u32 %s5289_s4, 3  ;;  %s4673_s4 = scalar_lea.vmem [#allocation25], %s2919_s20 }
  0xa7   : > { %s1173_s30 = scalar_lea.vmem %s5247_s10, %s2920_s21  ;;  %s4663_s19 = scalar_lea.vmem %s5248_s23, %s2920_s21 }
  0xa8   : > { %s3347_s2 = sshll.u32 %s1179_s27, 4  ;;  %s3348_s22 = sshll.u32 %s1179_s27, 5 }
  0xa9   : > { %s1182_s9 = scalar_lea.vmem %s5249_s28, %s3347_s2  ;;  %s4671_s5 = scalar_lea.vmem %s5250_s6, %s3348_s22 }
  0xaa   : > { %1192 = sbr.rel (%p2926_p7) target bundleno = 177 (0xb1), region = 168 }
  0xaf   : > { %v1193_v0 = vld [vmem:[%s1173_s30] sm:$0xff]  ;;  %vm1194_vm0 = vcmask 261120  }
  0xb0   : > { %1195 = vst.msk [vmem:[#allocation2] sm:$0xff] %vm1194_vm0, %v1193_v0 }
  0xb1 PF: > { %v3350_v1 = vld [vmem:[%s1182_s9 + $0x8] sm:$0xff]  ;;  %v3349_v2 = vld [vmem:[%s1182_s9] sm:$0xff]  ;;  %vm1220_vm1 = vcmask 261120   ;;  %s5251_s12 = scalar_lea.vmem [#allocation7], %s4612_s17  ;;  %s4200_s14 = smov 120   ;;  %vm1243_vm2 = vcmask 64512  }
  0xb2   : > { %1230 = vmatpush.bf16.msra.mxu0 %v3350_v1  ;;  %v3633_v5 = vld [vmem:[%s5251_s12] ss:$0 sm:$0xff]  ;;  %s4201_s9 = smov 112   ;;  %s4202_s6 = smov 104   ;;  %vm1285_vm3 = vcmask 1043456   ;;  %vm1365_vm4 = vcmask 130112  }
  0xb3   : > { %s4203_s13 = smov 96   ;;  %s4204_s28 = smov 88   ;;  %v3351_v50 = vld [vmem:[%s4620_s26] sm:$0xff]  ;;  %vm1381_vm5 = vcmask 130048   ;;  %v4206_v59 = vmov 0   ;;  %vm1521_vm10 = vcmask 523264  }
  0xb4   : > { %s5252_s15 = scalar_lea.vmem [#allocation4], %s4602_s11  ;;  %s4205_s22 = smov 8   ;;  %v1197_v58 = vld [vmem:[%s4663_s19] sm:$0xff]  ;;  %3631 = vset.pattern.permute.xlu1 %v4206_v59  ;;  %3632 = vset.pattern.permute.xlu0 %v4206_v59 }
  0xb5   : > { %v3634_v21 = vld [vmem:[%s5252_s15] ss:$0 sm:$0xff]  ;;  %s5253_s26 = scalar_lea.vmem [#allocation10], %s4612_s17  ;;  %s5254_s2 = scalar_lea.vmem [#allocation12], %s4612_s17 }
  0xb6   : > { %1231 = vmatpush.bf16.msra.mxu0 %v3349_v2  ;;  %v3635_v60 = vld [vmem:[%s5253_s26] ss:$0 sm:$0xff]  ;;  %s5256_s23 = scalar_lea.vmem [#allocation16], %s4612_s17  ;;  %s5257_s3 = scalar_lea.vmem [#allocation18], %s4612_s17 }
  0xb7   : > { %v4676_v3 = vld [vmem:[#allocation2] sm:$0xff]  ;;  %s5259_s29 = scalar_lea.vmem [#allocation21], %s4612_s17  ;;  %s5260_s30 = sld [smem:[#allocation37_spill]] }
  0xb8   : > { %v1199_v4 = vpack.c.bf16 %v4676_v3, %v4676_v3 }
  0xba   : > { %2935 = vmatmul.msk.bf16.vlgmr.msra.gmra.mxu0 %vm1220_vm1, %v1199_v4 }
  0xbb   : > { %1392 = vmatpush.bf16.msrb.mxu0 %v3351_v50 }
  0xbd   : > { %p2971_p8 = scmp.ne.s32.totalorder %s5260_s30, 1 }
  0xbe   : > { %s5261_s27 = sld [smem:[#allocation64_spill]] (!%p2971_p8) }
  0xbf   : > { %s5264_s19 = sld [smem:[#allocation68_spill]] (!%p2971_p8) }
  0xc0   : > { %s5267_s16 = sld [smem:[#allocation71_spill]] (!%p2971_p8) }
  0xc4   : > { %s5262_s21 = smov (!%p2971_p8), %s5261_s27 }
 0x137   : > { %v1233_v6 = vpop.f32.mrf.mxu0 }
 0x138   : > { %v1234_v7 = vadd.f32 %v3633_v5, %v1233_v6  ;;  %v4207_v5 = vmov 32.0  }
 0x13a   : > { %v1237_v8 = vpack.c.bf16 %v1234_v7, %v1234_v7 }
 0x13c   : > { %v1239_v9 = vunpack.c.l.b16 %v1237_v8 }
 0x13e   : > { %v1240_v10 = vpack.c.b16 %v1239_v9, %v1239_v9 }
 0x13f   : > { %v1235_v11 = vpop.f32.mrf.mxu0 }
 0x140   : > { %1303 = vrot.lane.b32.xlu1 %v1240_v10, %s4200_s14  ;;  %1241 = vrot.lane.b32.xlu0 %v1240_v10, %s4201_s9 }
 0x148   : > { %1305 = vrot.lane.b32.xlu0 %v1240_v10, %s4202_s6 }
 0x150   : > { %1280 = vrot.lane.b32.xlu0 %v1240_v10, %s4203_s13 }
 0x158   : > { %1340 = vrot.lane.b32.xlu0 %v1240_v10, %s4204_s28  ;;  %v3353_v10 = vld [vmem:[%s4634_s18 + $0x8] sm:$0xff] }
 0x1b2   : > { %v1242_v12 = vpop.permute.xlu0 %1241  ;;  %v1304_v16 = vpop.permute.xlu1 %1303 }
 0x1b3   : > { %v1248_v13 = vsel %vm1243_vm2, %v1242_v12, 0 }
 0x1b4   : > { %1257 = vmatpush.bf16.xpose.msra.mxu1 %v1248_v13 }
 0x1ba   : > { %v1306_v14 = vpop.permute.xlu0 %1305 }
 0x1bb   : > { %2936 = vmatmul.msk.bf16.vlgmr.msra.gmra.mxu1 %vm1243_vm2, %v1237_v8  ;;  %v1311_v15 = vsel %vm1243_vm2, %v1306_v14, 0 }
 0x1bc   : > { %1320 = vmatpush.bf16.xpose.msra.mxu3 %v1311_v15  ;;  %1476 = vmatpush.bf16.msrb.mxu1 %v3353_v10 }
 0x1c2   : > { %v1281_v17 = vpop.permute.xlu0 %1280 }
 0x1c3   : > { %2938 = vmatmul.msk.bf16.vlgmr.msra.gmra.mxu3 %vm1243_vm2, %v1304_v16  ;;  %v1287_v18 = vsel %vm1285_vm3, %v1281_v17, 0 }
 0x1c4   : > { %1296 = vmatpush.bf16.msra.mxu2 %v1287_v18 }
 0x1ca   : > { %v1341_v19 = vpop.permute.xlu0 %1340 }
 0x1cb   : > { %v1346_v20 = vsel %vm1285_vm3, %v1341_v19, 0  ;;  %v3357_v19 = vld [vmem:[%s4671_s5 + $0x18] sm:$0xff] }
 0x1cc   : > { %1355 = vmatpush.bf16.msrb.mxu2 %v1346_v20  ;;  %1529 = vmatpush.bf16.msrb.mxu3 %v3357_v19 }
 0x238   : > { %v1259_v22 = vpop.f32.mrf.mxu1 }
 0x239   : > { %v1263_v23 = vmul.f32 0.35355338, %v1259_v22  ;;  %v3355_v22 = vld [vmem:[%s4671_s5 + $0x8] sm:$0xff] }
 0x23b   : > { %v1267_v24 = vadd.f32 %v3634_v21, %v1263_v23 }
 0x23d   : > { %v1268_v25 = vsel %vm1243_vm2, %v1267_v24, -inf }
 0x23e   : > { %1269 = vmax.xlane.f32.xlu1 %v1268_v25 }
 0x240   : > { %v1261_v26 = vpop.f32.mrf.mxu1 }
 0x246   : > { %v1322_v27 = vpop.f32.mrf.mxu3 }
 0x247   : > { %v1326_v28 = vmul.f32 0.35355338, %v1322_v27 }
 0x249   : > { %v1327_v29 = vadd.f32 %v3634_v21, %v1326_v28  ;;  %v3356_v21 = vld [vmem:[%s4671_s5 + $0x10] sm:$0xff] }
 0x24a   : > { %1530 = vmatpush.bf16.msrb.mxu3 %v3356_v21 }
 0x24b   : > { %v1328_v30 = vsel %vm1243_vm2, %v1327_v29, -inf }
 0x24c   : > { %1329 = vmax.xlane.f32.xlu2 %v1328_v30  ;;  %v3636_v30 = vld [vmem:[%s5254_s2] ss:$0 sm:$0xff] }
 0x24e   : > { %v1324_v31 = vpop.f32.mrf.mxu3  ;;  %1531 = vmatpush.bf16.msrb.mxu3 %v3355_v22 }
 0x257   : > { %1442 = vperm.xlu1 %3631, %v1197_v58  }
 0x2b1   : > { %v1270_v32 = vpop.xlane.xlu1 %1269 }
 0x2b2   : > { %v1271_v33 = vsub.f32 %v1267_v24, %v1270_v32 }
 0x2b4   : > { %v1272_v34 = vmul.f32 1.442695, %v1271_v33 }
 0x2b6   : > { %3642 = vpow2.f32 %v1272_v34 }
 0x2bc   : > { %v3643_v35 = vpop.eup %3642 }
 0x2bd   : > { %v1274_v36 = vsel %vm1243_vm2, %v3643_v35, 0.0 }
 0x2be   : > { %1275 = vadd.xlane.f32.xlu2 %v1274_v36 }
 0x2bf   : > { %v1330_v37 = vpop.xlane.xlu2 %1329 }
 0x2c0   : > { %v1331_v38 = vsub.f32 %v1327_v29, %v1330_v37 }
 0x2c2   : > { %v1332_v39 = vmul.f32 1.442695, %v1331_v38 }
 0x2c4   : > { %3644 = vpow2.f32 %v1332_v39  ;;  %v3354_v39 = vld [vmem:[%s4671_s5] sm:$0xff]  ;;  %s5258_s5 = scalar_lea.vmem [#allocation19], %s4612_s17 }
 0x2c5   : > { %1532 = vmatpush.bf16.msrb.mxu3 %v3354_v39 }
 0x2ca   : > { %v3645_v40 = vpop.eup %3644 }
 0x2cb   : > { %v1334_v41 = vsel %vm1243_vm2, %v3645_v40, 0.0 }
 0x2cc   : > { %1335 = vadd.xlane.f32.xlu2 %v1334_v41 }
 0x331   : > { %v1276_v42 = vpop.xlane.xlu2 %1275 }
 0x332   : > { %3646 = vrcp.f32 %v1276_v42 }
 0x338   : > { %v3647_v43 = vpop.eup %3646 }
 0x339   : > { %v1278_v44 = vmul.f32 %v3647_v43, %v3643_v35  ;;  %v1443_v35 = vpop.permute.xlu1 %1442 }
 0x33b   : > { %v1279_v45 = vpack.c.bf16 %v1278_v44, %v1278_v44 }
 0x33d   : > { %2937 = vmatmul.msk.bf16.vlgmr.msra.gmra.mxu2 %vm1243_vm2, %v1279_v45 }
 0x33f   : > { %v1336_v46 = vpop.xlane.xlu2 %1335 }
 0x340   : > { %3648 = vrcp.f32 %v1336_v46  ;;  %v3639_v46 = vld [vmem:[%s5257_s3] ss:$0 sm:$0xff] }
 0x341   : > { %3650 = vrcp.f32 %v4207_v5  ;;  %v3640_v5 = vld [vmem:[%s5258_s5] ss:$0 sm:$0xff] }
 0x346   : > { %v3649_v47 = vpop.eup %3648 }
 0x347   : > { %v1338_v48 = vmul.f32 %v3649_v47, %v3645_v40  ;;  %v3651_v6 = vpop.eup %3650  ;;  %v3638_v40 = vld [vmem:[%s5256_s23] ss:$0 sm:$0xff]  ;;  %s5263_s23 = sld [smem:[#allocation66_spill]] (!%p2971_p8) }
 0x348   : > { %v1403_v7 = vmul.f32 32.0, %v3651_v6  ;;  %vm1407_vm6 = vweird.f32 %v3651_v6 }
 0x349   : > { %v1339_v49 = vpack.c.bf16 %v1338_v48, %v1338_v48 }
 0x34a   : > { %v1404_v8 = vsub.f32 1.0, %v1403_v7  ;;  %v3641_v7 = vld [vmem:[%s5259_s29] ss:$0 sm:$0xff]  ;;  %s5266_s29 = sld [smem:[#allocation70_spill]] (!%p2971_p8) }
 0x34c   : > { %v1405_v9 = vmul.f32 %v3651_v6, %v1404_v8 }
 0x34d   : > { %2939 = vmatmul.msk.bf16.vlgmr.msrb.gmra.mxu2 %vm1243_vm2, %v1339_v49 }
 0x34e   : > { %v1406_v11 = vadd.f32 %v3651_v6, %v1405_v9 }
 0x350   : > { %v1408_v12 = vsel %vm1407_vm6, %v3651_v6, %v1406_v11 }
 0x3c0   : > { %v1298_v51 = vpop.f32.mrf.mxu2 }
 0x3c1   : > { %1302 = vst.msk [vmem:[#allocation3] sm:$0xff] %vm1243_vm2, %v1298_v51 }
 0x3c8   : > { %v1300_v52 = vpop.f32.mrf.mxu2 }
 0x3d0   : > { %v1357_v53 = vpop.f32.mrf.mxu2 }
 0x3d1   : > { %1362 = vrot.lane.b32.xlu2 %v1357_v53, %s4205_s22 }
 0x3d8   : > { %v1359_v54 = vpop.f32.mrf.mxu2 }
 0x42b   : > { %v1363_v55 = vpop.permute.xlu2 %1362 }
 0x42c   : > { %1366 = vst.msk [vmem:[#allocation3] sm:$0xff] %vm1365_vm4, %v1363_v55 }
 0x433   : > { %v1367_v56 = vld [vmem:[#allocation3] sm:$0xff] }
 0x434   : > { %v1368_v57 = vpack.c.bf16 %v1367_v56, %v1367_v56 }
 0x436   : > { %2944 = vmatmul.msk.bf16.vlgmr.msrb.gmra.mxu0 %vm1381_vm5, %v1368_v57 }
 0x4b3   : > { %v1394_v61 = vpop.f32.mrf.mxu0 }
 0x4b4   : > { %v1395_v62 = vadd.f32 %v3635_v60, %v1394_v61 }
 0x4b6   : > { %v1398_v63 = vadd.f32 %v1395_v62, %v4676_v3  ;;  %v3352_v3 = vld [vmem:[%s4634_s18] sm:$0xff]  ;;  %s5255_s18 = scalar_lea.vmem [#allocation13], %s4612_s17 }
 0x4b7   : > { %1477 = vmatpush.bf16.msrb.mxu1 %v3352_v3  ;;  %v3637_v32 = vld [vmem:[%s5255_s18] ss:$0 sm:$0xff]  ;;  %s5265_s18 = sld [smem:[#allocation67_spill]] (!%p2971_p8) }
 0x4b8   : > { %v1399_v0 = vsel %vm1220_vm1, %v1398_v63, 0.0  ;;  %v1410_v1 = vmul.f32 %v1398_v63, %v1398_v63 }
 0x4b9   : > { %1400 = vadd.xlane.f32.xlu0 %v1399_v0 }
 0x4ba   : > { %v1411_v2 = vsel %vm1220_vm1, %v1410_v1, 0.0 }
 0x4bb   : > { %v1396_v4 = vpop.f32.mrf.mxu0  ;;  %1412 = vadd.xlane.f32.xlu2 %v1411_v2 }
 0x52c   : > { %v1401_v13 = vpop.xlane.xlu0 %1400 }
 0x52d   : > { %v1409_v14 = vmul.f32 %v1408_v12, %v1401_v13 }
 0x52e   : > { %v1413_v15 = vpop.xlane.xlu2 %1412 }
 0x52f   : > { %v1415_v16 = vmul.f32 %v1409_v14, %v1409_v14  ;;  %v1414_v17 = vmul.f32 %v1413_v15, %v1408_v12  ;;  %v1417_v29 = vsub.f32 %v1398_v63, %v1409_v14 }
 0x531   : > { %v1416_v18 = vsub.f32 %v1414_v17, %v1415_v16 }
 0x533   : > { %v1418_v20 = vadd.f32 1e-05, %v1416_v18 }
 0x535   : > { %3652 = vrsqrt.f32 %v1418_v20  ;;  %vm1425_vm8 = vweird.f32 %v1418_v20 }
 0x53b   : > { %v3653_v23 = vpop.eup %3652 }
 0x53c   : > { %v1420_v24 = vmul.f32 %v3653_v23, %v1418_v20  ;;  %vm1426_vm7 = vweird.f32 %v3653_v23 }
 0x53d   : > { %vm1427_vm9 = vmor %vm1425_vm8, %vm1426_vm7 }
 0x53e   : > { %v1421_v25 = vmul.f32 %v3653_v23, %v1420_v24 }
 0x540   : > { %v1422_v26 = vmul.f32 0.5, %v1421_v25 }
 0x542   : > { %v1423_v27 = vsub.f32 1.5, %v1422_v26 }
 0x544   : > { %v1424_v28 = vmul.f32 %v3653_v23, %v1423_v27 }
 0x546   : > { %v1428_v31 = vsel %vm1427_vm9, %v3653_v23, %v1424_v28 }
 0x547   : > { %v1429_v33 = vmul.f32 %v1428_v31, %v1417_v29 }
 0x549   : > { %v1434_v34 = vmul.f32 %v3636_v30, %v1429_v33 }
 0x54b   : > { %v1439_v36 = vadd.f32 %v3637_v32, %v1434_v34 }
 0x54d   : > { %v1445_v37 = vmul.f32 %v1443_v35, %v1439_v36 }
 0x54f   : > { %v1446_v38 = vpack.c.bf16 %v1445_v37, %v1445_v37 }
 0x551   : > { %2953 = vmatmul.msk.bf16.vlgmr.msrb.gmra.mxu1 %vm1220_vm1, %v1446_v38 }
 0x5ce   : > { %v1479_v41 = vpop.f32.mrf.mxu1 }
 0x5cf   : > { %v1480_v42 = vadd.f32 %v3638_v40, %v1479_v41 }
 0x5d1   : > { %v1483_v43 = vmax.f32 %v1480_v42, 0.0 }
 0x5d3   : > { %v1484_v44 = vpack.c.bf16 %v1483_v43, %v1483_v43 }
 0x5d5   : > { %2970 = vmatmul.msk.bf16.vlgmr.msrb.gmra.mxu3 %vm1521_vm10, %v1484_v44 }
 0x5d6   : > { %v1481_v45 = vpop.f32.mrf.mxu1 }
 0x658   : > { %v1534_v47 = vpop.f32.mrf.mxu3 }
 0x659   : > { %v1535_v48 = vadd.f32 %v3639_v46, %v1534_v47 }
 0x65b   : > { %v1538_v49 = vadd.f32 %v1535_v48, %v1445_v37 }
 0x65d   : > { %v1539_v50 = vsel %vm1220_vm1, %v1538_v49, 0.0  ;;  %v1543_v51 = vmul.f32 %v1538_v49, %v1538_v49 }
 0x65e   : > { %1540 = vadd.xlane.f32.xlu0 %v1539_v50 }
 0x65f   : > { %v1544_v52 = vsel %vm1220_vm1, %v1543_v51, 0.0 }
 0x660   : > { %v1536_v53 = vpop.f32.mrf.mxu3  ;;  %1545 = vadd.xlane.f32.xlu1 %v1544_v52 }
 0x6d1   : > { %v1541_v54 = vpop.xlane.xlu0 %1540 }
 0x6d2   : > { %v1542_v55 = vmul.f32 %v1541_v54, %v1408_v12 }
 0x6d3   : > { %v1546_v56 = vpop.xlane.xlu1 %1545 }
 0x6d4   : > { %v1548_v57 = vmul.f32 %v1542_v55, %v1542_v55  ;;  %v1547_v58 = vmul.f32 %v1546_v56, %v1408_v12  ;;  %v1550_v4 = vsub.f32 %v1538_v49, %v1542_v55 }
 0x6d6   : > { %v1549_v59 = vsub.f32 %v1547_v58, %v1548_v57 }
 0x6d8   : > { %v1551_v60 = vadd.f32 1e-05, %v1549_v59 }
 0x6da   : > { %3654 = vrsqrt.f32 %v1551_v60  ;;  %vm1558_vm12 = vweird.f32 %v1551_v60 }
 0x6e0   : > { %v3655_v61 = vpop.eup %3654 }
 0x6e1   : > { %v1553_v62 = vmul.f32 %v3655_v61, %v1551_v60  ;;  %vm1559_vm11 = vweird.f32 %v3655_v61 }
 0x6e2   : > { %vm1560_vm13 = vmor %vm1558_vm12, %vm1559_vm11 }
 0x6e3   : > { %v1554_v63 = vmul.f32 %v3655_v61, %v1553_v62 }
 0x6e5   : > { %v1555_v0 = vmul.f32 0.5, %v1554_v63 }
 0x6e7   : > { %v1556_v1 = vsub.f32 1.5, %v1555_v0 }
 0x6e9   : > { %v1557_v2 = vmul.f32 %v3655_v61, %v1556_v1 }
 0x6eb   : > { %v1561_v6 = vsel %vm1560_vm13, %v3655_v61, %v1557_v2 }
 0x6ec   : > { %v1562_v8 = vmul.f32 %v1561_v6, %v1550_v4 }
 0x6ee   : > { %v1567_v9 = vmul.f32 %v3640_v5, %v1562_v8 }
 0x6f0   : > { %v1572_v10 = vadd.f32 %v3641_v7, %v1567_v9  ;;  %1578 = sbr.rel (%p2971_p8) target bundleno = 2367 (0x93f), region = 172 }
 0x6f2   : > { %v1573_v11 = vmul.f32 %v1572_v10, %v1443_v35 }
 0x6f4   : > { %1574 = vst.msk [vmem:[#allocation2] sm:$0xff] %vm1220_vm1, %v1573_v11 }
 0x6f5   : > { %v2994_v3 = vld [vmem:[%s5261_s27 + $0x28] sm:$0xf]  ;;  %v3365_v12 = vld [vmem:[%s5262_s21 + $0x38] sm:$0xf0]  ;;  %v3363_v13 = vld [vmem:[%s5262_s21 + $0x2c] sm:$0xf]  ;;  %v1579_v37 = vpack.c.bf16 %v1573_v11, %v1573_v11 }
 0x6f6   : > { %v2995_v14 = vor.u32 %v3365_v12, %v2994_v3  ;;  %v2996_v15 = vld [vmem:[%s5262_s21 + $0x3c] sm:$0xf0]  ;;  %v3002_v16 = vld [vmem:[%s5262_s21 + $0x30] sm:$0xf]  ;;  %v3366_v17 = vld [vmem:[%s5262_s21 + $0x40] sm:$0xf0] }
 0x6f7   : > { %v2999_v18 = vor.u32 %v3363_v13, %v2996_v15  ;;  %v3003_v19 = vor.u32 %v3366_v17, %v3002_v16  ;;  %v3364_v20 = vld [vmem:[%s5262_s21 + $0x34] sm:$0xf]  ;;  %v3004_v21 = vld [vmem:[%s5262_s21 + $0x44] sm:$0xf0]  ;;  %v2974_v22 = vld [vmem:[%s5262_s21] sm:$0xf] }
 0x6f8   : > { %1665 = vmatpush.bf16.msra.mxu0 %v2995_v14  ;;  %v3007_v23 = vor.u32 %v3364_v20, %v3004_v21  ;;  %v3360_v24 = vld [vmem:[%s5262_s21 + $0x10] sm:$0xf0]  ;;  %v3358_v25 = vld [vmem:[%s5262_s21 + $0x4] sm:$0xf]  ;;  %v2976_v26 = vld [vmem:[%s5262_s21 + $0x14] sm:$0xf0] }
 0x6f9   : > { %1678 = vmatpush.bf16.msra.mxu1 %v2999_v18  ;;  %1691 = vmatpush.bf16.msra.mxu2 %v3003_v19  ;;  %v2975_v27 = vor.u32 %v3360_v24, %v2974_v22  ;;  %v2979_v28 = vor.u32 %v3358_v25, %v2976_v26  ;;  %v2982_v29 = vld [vmem:[%s5262_s21 + $0x8] sm:$0xf]  ;;  %v3361_v30 = vld [vmem:[%s5262_s21 + $0x18] sm:$0xf0]  ;;  %v3359_v31 = vld [vmem:[%s5262_s21 + $0xc] sm:$0xf] }
 0x6fa   : > { %1704 = vmatpush.bf16.msra.mxu3 %v3007_v23  ;;  %v2983_v32 = vor.u32 %v3361_v30, %v2982_v29  ;;  %v2984_v33 = vld [vmem:[%s5262_s21 + $0x1c] sm:$0xf0]  ;;  %v3010_v34 = vld [vmem:[%s5262_s21 + $0x38] sm:$0xf]  ;;  %v3367_v35 = vld [vmem:[%s5262_s21 + $0x48] sm:$0xf0] }
 0x6fb   : > { %v2987_v36 = vor.u32 %v3359_v31, %v2984_v33  ;;  %v3011_v38 = vor.u32 %v3367_v35, %v3010_v34  ;;  %v2990_v39 = vld [vmem:[%s5262_s21 + $0x10] sm:$0xf]  ;;  %v3362_v40 = vld [vmem:[%s5262_s21 + $0x20] sm:$0xf0]  ;;  %v3375_v41 = vld [vmem:[%s5263_s23 + $0x38] sm:$0xff] }
 0x6fc   : > { %1666 = vmatpush.bf16.msra.mxu0 %v2975_v27  ;;  %v3383_v42 = vld [vmem:[%s5263_s23 + $0x78] sm:$0xff]  ;;  %v2991_v43 = vor.u32 %v3362_v40, %v2990_v39  ;;  %v3374_v45 = vld [vmem:[%s5263_s23 + $0x30] sm:$0xff]  ;;  %v3373_v49 = vld [vmem:[%s5263_s23 + $0x28] sm:$0xff] }
 0x6fd   : > { %1679 = vmatpush.bf16.msra.mxu1 %v2979_v28  ;;  %1692 = vmatpush.bf16.msra.mxu2 %v2983_v32  ;;  %v3391_v44 = vld [vmem:[%s5263_s23 + $0xb8] sm:$0xff]  ;;  %v3382_v47 = vld [vmem:[%s5263_s23 + $0x70] sm:$0xff]  ;;  %v3381_v51 = vld [vmem:[%s5263_s23 + $0x68] sm:$0xff] }
 0x6fe   : > { %1705 = vmatpush.bf16.msra.mxu3 %v2987_v36  ;;  %v3399_v46 = vld [vmem:[%s5263_s23 + $0xf8] sm:$0xff]  ;;  %v3390_v48 = vld [vmem:[%s5263_s23 + $0xb0] sm:$0xff]  ;;  %v3389_v52 = vld [vmem:[%s5263_s23 + $0xa8] sm:$0xff] }
 0x6ff   : > { %3012 = vmatmul.msk.bf16.vlgmr.msra.gmra.mxu0 %vm1220_vm1, %v1579_v37  ;;  %v3398_v50 = vld [vmem:[%s5263_s23 + $0xf0] sm:$0xff]  ;;  %v3372_v53 = vld [vmem:[%s5263_s23 + $0x20] sm:$0xff]  ;;  %v3397_v54 = vld [vmem:[%s5263_s23 + $0xe8] sm:$0xff] }
 0x700   : > { %1717 = vmatpush.bf16.msrb.mxu0 %v3011_v38  ;;  %3013 = vmatmul.msk.bf16.vlgmr.msra.gmra.mxu1 %vm1220_vm1, %v1579_v37  ;;  %v3380_v55 = vld [vmem:[%s5263_s23 + $0x60] sm:$0xff]  ;;  %v3371_v57 = vld [vmem:[%s5263_s23 + $0x18] sm:$0xff]  ;;  %v3370_v61 = vld [vmem:[%s5263_s23 + $0x10] sm:$0xff] }
 0x701   : > { %2058 = vmatpush.bf16.msrb.mxu1 %v3375_v41  ;;  %3014 = vmatmul.msk.bf16.vlgmr.msra.gmra.mxu2 %vm1220_vm1, %v1579_v37  ;;  %v3388_v56 = vld [vmem:[%s5263_s23 + $0xa0] sm:$0xff]  ;;  %v3379_v59 = vld [vmem:[%s5263_s23 + $0x58] sm:$0xff]  ;;  %v3378_v63 = vld [vmem:[%s5263_s23 + $0x50] sm:$0xff] }
 0x702   : > { %3015 = vmatmul.msk.bf16.vlgmr.msra.gmra.mxu3 %vm1220_vm1, %v1579_v37  ;;  %2071 = vmatpush.bf16.msrb.mxu2 %v3383_v42  ;;  %v3396_v58 = vld [vmem:[%s5263_s23 + $0xe0] sm:$0xff]  ;;  %v3387_v60 = vld [vmem:[%s5263_s23 + $0x98] sm:$0xff]  ;;  %v3369_v0 = vld [vmem:[%s5263_s23 + $0x8] sm:$0xff] }
 0x703   : > { %2084 = vmatpush.bf16.msrb.mxu3 %v3391_v44  ;;  %v3395_v62 = vld [vmem:[%s5263_s23 + $0xd8] sm:$0xff]  ;;  %v3368_v1 = vld [vmem:[%s5263_s23] sm:$0xff]  ;;  %v3406_v4 = vld [vmem:[%s5263_s23 + $0x130] sm:$0xff] }
 0x704   : > { %1718 = vmatpush.bf16.msrb.mxu0 %v2991_v43  ;;  %v3407_v2 = vld [vmem:[%s5263_s23 + $0x138] sm:$0xff]  ;;  %v3377_v5 = vld [vmem:[%s5263_s23 + $0x48] sm:$0xff]  ;;  %v3386_v7 = vld [vmem:[%s5263_s23 + $0x90] sm:$0xff] }
 0x705   : > { %2059 = vmatpush.bf16.msrb.mxu1 %v3374_v45  ;;  %v3405_v6 = vld [vmem:[%s5263_s23 + $0x128] sm:$0xff]  ;;  %v3394_v8 = vld [vmem:[%s5263_s23 + $0xd0] sm:$0xff]  ;;  %v3376_v9 = vld [vmem:[%s5263_s23 + $0x40] sm:$0xff] }
 0x706   : > { %2072 = vmatpush.bf16.msrb.mxu2 %v3382_v47  ;;  %v3404_v10 = vld [vmem:[%s5263_s23 + $0x120] sm:$0xff]  ;;  %v3385_v11 = vld [vmem:[%s5263_s23 + $0x88] sm:$0xff]  ;;  %v3403_v12 = vld [vmem:[%s5263_s23 + $0x118] sm:$0xff] }
 0x707   : > { %2085 = vmatpush.bf16.msrb.mxu3 %v3390_v48  ;;  %v3393_v3 = vld [vmem:[%s5263_s23 + $0xc8] sm:$0xff]  ;;  %v3384_v13 = vld [vmem:[%s5263_s23 + $0x80] sm:$0xff]  ;;  %v3402_v15 = vld [vmem:[%s5263_s23 + $0x110] sm:$0xff] }
 0x708   : > { %2097 = vmatpush.bf16.msra.mxu0 %v3399_v46  ;;  %v3392_v14 = vld [vmem:[%s5263_s23 + $0xc0] sm:$0xff]  ;;  %v3401_v16 = vld [vmem:[%s5263_s23 + $0x108] sm:$0xff]  ;;  %v1592_v18 = vld [vmem:[#allocation22] sm:$0x1f] }
 0x709   : > { %2060 = vmatpush.bf16.msrb.mxu1 %v3373_v49  ;;  %v3400_v17 = vld [vmem:[%s5263_s23 + $0x100] sm:$0xff]  ;;  %v1594_v19 = vperm.slane %v1592_v18, 0  ;;  %v1595_v20 = vperm.slane %v1592_v18, 1  ;;  %v1596_v27 = vperm.slane %v1592_v18, 2  ;;  %v1597_v29 = vperm.slane %v1592_v18, 3 }
 0x70a   : > { %2073 = vmatpush.bf16.msrb.mxu2 %v3381_v51  ;;  %v1598_v41 = vperm.slane %v1592_v18, 4  ;;  %v3195_v49 = vld [vmem:[%s5264_s19 + $0x20] sm:$0xf]  ;;  %v3438_v18 = vld [vmem:[%s5266_s29 + $0xb0] sm:$0xff] }
 0x70b   : > { %2086 = vmatpush.bf16.msrb.mxu3 %v3389_v52  ;;  %v3412_v52 = vld [vmem:[%s5264_s19 + $0x24] sm:$0xf] }
 0x70c   : > { %2098 = vmatpush.bf16.msra.mxu0 %v3398_v50  ;;  %v3414_v50 = vld [vmem:[%s5264_s19 + $0x2c] sm:$0xf0] }
 0x70d   : > { %2061 = vmatpush.bf16.msrb.mxu1 %v3372_v53  ;;  %v3196_v51 = vor.u32 %v3414_v50, %v3195_v49  ;;  %v3197_v53 = vld [vmem:[%s5264_s19 + $0x30] sm:$0xf0]  ;;  %v3417_v49 = vld [vmem:[%s5266_s29 + $0x8] sm:$0xff] }
 0x70e   : > { %2074 = vmatpush.bf16.msrb.mxu2 %v3380_v55  ;;  %v3179_v55 = vld [vmem:[%s5264_s19] sm:$0xf]  ;;  %v3425_v50 = vld [vmem:[%s5266_s29 + $0x48] sm:$0xff] }
 0x70f   : > { %2087 = vmatpush.bf16.msrb.mxu3 %v3388_v56  ;;  %3016 = vmatmul.msk.bf16.vlgmr.msrb.gmra.mxu0 %vm1220_vm1, %v1579_v37  ;;  %v3410_v56 = vld [vmem:[%s5264_s19 + $0xc] sm:$0xf0] }
 0x710   : > { %2099 = vmatpush.bf16.msra.mxu0 %v3397_v54  ;;  %v3203_v54 = vld [vmem:[%s5264_s19 + $0x28] sm:$0xf] }
 0x711   : > { %2062 = vmatpush.bf16.msrb.mxu1 %v3371_v57  ;;  %v3200_v57 = vor.u32 %v3412_v52, %v3197_v53  ;;  %v3416_v52 = vld [vmem:[%s5266_s29] sm:$0xff] }
 0x712   : > { %2075 = vmatpush.bf16.msrb.mxu2 %v3379_v59  ;;  %v3180_v59 = vor.u32 %v3410_v56, %v3179_v55  ;;  %v3424_v53 = vld [vmem:[%s5266_s29 + $0x40] sm:$0xff]  ;;  %v3443_v55 = vld [vmem:[%s5266_s29 + $0xd8] sm:$0xff]  ;;  %v3442_v56 = vld [vmem:[%s5266_s29 + $0xd0] sm:$0xff] }
 0x713   : > { %2088 = vmatpush.bf16.msrb.mxu3 %v3387_v60 }
 0x714   : > { %2100 = vmatpush.bf16.msra.mxu0 %v3396_v58  ;;  %v3415_v58 = vld [vmem:[%s5264_s19 + $0x34] sm:$0xf0] }
 0x715   : > { %2063 = vmatpush.bf16.msrb.mxu1 %v3370_v61  ;;  %v3204_v60 = vor.u32 %v3415_v58, %v3203_v54  ;;  %v3408_v61 = vld [vmem:[%s5264_s19 + $0x4] sm:$0xf] }
 0x716   : > { %2076 = vmatpush.bf16.msrb.mxu2 %v3378_v63  ;;  %v3187_v63 = vld [vmem:[%s5264_s19 + $0x8] sm:$0xf]  ;;  %v3444_v54 = vld [vmem:[%s5266_s29 + $0xe0] sm:$0xff] }
 0x717   : > { %2089 = vmatpush.bf16.msrb.mxu3 %v3386_v7  ;;  %v3440_v58 = vld [vmem:[%s5266_s29 + $0xc0] sm:$0xff] }
 0x718   : > { %2101 = vmatpush.bf16.msra.mxu0 %v3395_v62  ;;  %v3181_v62 = vld [vmem:[%s5264_s19 + $0x10] sm:$0xf0] }
 0x719   : > { %2064 = vmatpush.bf16.msrb.mxu1 %v3369_v0  ;;  %v3184_v0 = vor.u32 %v3408_v61, %v3181_v62 }
 0x71a   : > { %2077 = vmatpush.bf16.msrb.mxu2 %v3377_v5  ;;  %v3205_v5 = vld [vmem:[%s5264_s19 + $0x38] sm:$0xf0] }
 0x71b   : > { %2090 = vmatpush.bf16.msrb.mxu3 %v3385_v11  ;;  %v3656_v11 = vld [vmem:[%s5265_s18] ss:$0 sm:$0xff] }
 0x71c   : > { %2102 = vmatpush.bf16.msra.mxu0 %v3394_v8  ;;  %v3189_v8 = vld [vmem:[%s5264_s19 + $0x18] sm:$0xf0] }
 0x71d   : > { %2065 = vmatpush.bf16.msrb.mxu1 %v3368_v1  ;;  %v3411_v1 = vld [vmem:[%s5264_s19 + $0x14] sm:$0xf0] }
 0x71e   : > { %2078 = vmatpush.bf16.msrb.mxu2 %v3376_v9 }
 0x71f   : > { %2091 = vmatpush.bf16.msrb.mxu3 %v3384_v13 }
 0x720   : > { %2103 = vmatpush.bf16.msra.mxu0 %v3393_v3 }
 0x721   : > { %2110 = vmatpush.bf16.msra.mxu1 %v3407_v2  ;;  %v3188_v2 = vor.u32 %v3411_v1, %v3187_v63 }
 0x722   : > { %2192 = vmatpush.bf16.msra.mxu2 %v3196_v51  ;;  %v3445_v51 = vld [vmem:[%s5266_s29 + $0xe8] sm:$0xff] }
 0x723   : > { %2205 = vmatpush.bf16.msra.mxu3 %v3200_v57  ;;  %v3441_v57 = vld [vmem:[%s5266_s29 + $0xc8] sm:$0xff] }
 0x724   : > { %2104 = vmatpush.bf16.msra.mxu0 %v3392_v14  ;;  %v3439_v14 = vld [vmem:[%s5266_s29 + $0xb8] sm:$0xff] }
 0x725   : > { %2111 = vmatpush.bf16.msra.mxu1 %v3406_v4  ;;  %v3413_v4 = vld [vmem:[%s5264_s19 + $0x2c] sm:$0xf] }
 0x726   : > { %2193 = vmatpush.bf16.msra.mxu2 %v3180_v59  ;;  %v3208_v7 = vor.u32 %v3413_v4, %v3205_v5  ;;  %v2133_v59 = vld [vmem:[#allocation24] sm:$0xf] }
 0x727   : > { %2206 = vmatpush.bf16.msra.mxu3 %v3184_v0  ;;  %v2135_v63 = vperm.slane %v2133_v59, 0  ;;  %v2136_v0 = vperm.slane %v2133_v59, 1 }
 0x728   : > { %2218 = vmatpush.bf16.msrb.mxu0 %v3204_v60  ;;  %v2137_v60 = vperm.slane %v2133_v59, 2 }
 0x729   : > { %2112 = vmatpush.bf16.msra.mxu1 %v3405_v6  ;;  %v3409_v6 = vld [vmem:[%s5264_s19 + $0xc] sm:$0xf] }
 0x72a   : > { %v3192_v9 = vor.u32 %v3409_v6, %v3189_v8 }
 0x72c   : > { %2219 = vmatpush.bf16.msrb.mxu0 %v3188_v2 }
 0x72d   : > { %2113 = vmatpush.bf16.msra.mxu1 %v3404_v10 }
 0x731   : > { %2114 = vmatpush.bf16.msra.mxu1 %v3403_v12 }
 0x735   : > { %2115 = vmatpush.bf16.msra.mxu1 %v3402_v15  ;;  %v3423_v15 = vld [vmem:[%s5266_s29 + $0x38] sm:$0xff] }
 0x739   : > { %2116 = vmatpush.bf16.msra.mxu1 %v3401_v16  ;;  %v3431_v16 = vld [vmem:[%s5266_s29 + $0x78] sm:$0xff] }
 0x73d   : > { %2117 = vmatpush.bf16.msra.mxu1 %v3400_v17 }
 0x77c   : > { %v1668_v21 = vpop.f32.mrf.mxu0 }
 0x77d   : > { %v1669_v22 = vadd.f32 %v1668_v21, %v1594_v19  ;;  %v1681_v23 = vpop.f32.mrf.mxu1  ;;  %v3422_v19 = vld [vmem:[%s5266_s29 + $0x30] sm:$0xff] }
 0x77e   : > { %v1682_v24 = vadd.f32 %v1681_v23, %v1595_v20  ;;  %v3430_v20 = vld [vmem:[%s5266_s29 + $0x70] sm:$0xff] }
 0x77f   : > { %v1724_v25 = vmax.f32 %v1669_v22, 0.0 }
 0x780   : > { %v1725_v26 = vmax.f32 %v1682_v24, 0.0  ;;  %v3437_v24 = vld [vmem:[%s5266_s29 + $0xa8] sm:$0xff] }
 0x781   : > { %v1729_v28 = vpack.c.bf16 %v1724_v25, %v1724_v25  ;;  %v3421_v25 = vld [vmem:[%s5266_s29 + $0x28] sm:$0xff] }
 0x782   : > { %v1730_v30 = vpack.c.bf16 %v1725_v26, %v1725_v26 }
 0x783   : > { %2066 = vmatmul.bf16.vlgmr.msrb.gmra.mxu1 %v1729_v28 }
 0x784   : > { %v1694_v31 = vpop.f32.mrf.mxu2  ;;  %2079 = vmatmul.bf16.vlgmr.msrb.gmra.mxu2 %v1730_v30  ;;  %v1670_v34 = vpop.f32.mrf.mxu0  ;;  %2532 = vmatpush.bf16.msrb.mxu1 %v3439_v14  ;;  %v2138_v14 = vperm.slane %v2133_v59, 3 }
 0x785   : > { %v1695_v32 = vadd.f32 %v1694_v31, %v1596_v27  ;;  %v1707_v33 = vpop.f32.mrf.mxu3  ;;  %v1683_v36 = vpop.f32.mrf.mxu1  ;;  %2231 = vmatpush.bf16.msrb.mxu2 %v3208_v7  ;;  %v3429_v27 = vld [vmem:[%s5266_s29 + $0x68] sm:$0xff]  ;;  %v3428_v34 = vld [vmem:[%s5266_s29 + $0x60] sm:$0xff] }
 0x786   : > { %v1708_v35 = vadd.f32 %v1707_v33, %v1597_v29  ;;  %v3420_v33 = vld [vmem:[%s5266_s29 + $0x20] sm:$0xff] }
 0x787   : > { %v1726_v37 = vmax.f32 %v1695_v32, 0.0  ;;  %v3436_v32 = vld [vmem:[%s5266_s29 + $0xa0] sm:$0xff] }
 0x788   : > { %v1727_v38 = vmax.f32 %v1708_v35, 0.0  ;;  %2533 = vmatpush.bf16.msrb.mxu1 %v3438_v18 }
 0x789   : > { %v1731_v39 = vpack.c.bf16 %v1726_v37, %v1726_v37  ;;  %2232 = vmatpush.bf16.msrb.mxu2 %v3192_v9  ;;  %v3447_v37 = vld [vmem:[%s5266_s29 + $0xf8] sm:$0xff] }
 0x78a   : > { %v1732_v40 = vpack.c.bf16 %v1727_v38, %v1727_v38 }
 0x78b   : > { %2092 = vmatmul.bf16.vlgmr.msrb.gmra.mxu3 %v1731_v39  ;;  %v3435_v39 = vld [vmem:[%s5266_s29 + $0x98] sm:$0xff] }
 0x78c   : > { %2105 = vmatmul.bf16.vlgmr.msra.gmra.mxu0 %v1732_v40  ;;  %v1696_v42 = vpop.f32.mrf.mxu2  ;;  %v1720_v44 = vpop.f32.mrf.mxu0  ;;  %2506 = vmatpush.bf16.msrb.mxu3 %v3423_v15  ;;  %v3419_v40 = vld [vmem:[%s5266_s29 + $0x18] sm:$0xff] }
 0x78d   : > { %v1709_v43 = vpop.f32.mrf.mxu3  ;;  %v1721_v45 = vadd.f32 %v1720_v44, %v1598_v41  ;;  %2519 = vmatpush.bf16.msra.mxu0 %v3431_v16  ;;  %2534 = vmatpush.bf16.msrb.mxu1 %v3437_v24  ;;  %v3427_v41 = vld [vmem:[%s5266_s29 + $0x58] sm:$0xff]  ;;  %v3433_v44 = vld [vmem:[%s5266_s29 + $0x88] sm:$0xff] }
 0x78e   : > { %v3434_v43 = vld [vmem:[%s5266_s29 + $0x90] sm:$0xff] }
 0x78f   : > { %v1728_v46 = vmax.f32 %v1721_v45, 0.0  ;;  %v3418_v45 = vld [vmem:[%s5266_s29 + $0x10] sm:$0xff] }
 0x790   : > { %2507 = vmatpush.bf16.msrb.mxu3 %v3422_v19 }
 0x791   : > { %v1733_v47 = vpack.c.bf16 %v1728_v46, %v1728_v46  ;;  %2520 = vmatpush.bf16.msra.mxu0 %v3430_v20  ;;  %2535 = vmatpush.bf16.msrb.mxu1 %v3436_v32  ;;  %v3426_v46 = vld [vmem:[%s5266_s29 + $0x50] sm:$0xff] }
 0x793   : > { %2118 = vmatmul.bf16.vlgmr.msra.gmra.mxu1 %v1733_v47  ;;  %v3446_v47 = vld [vmem:[%s5266_s29 + $0xf0] sm:$0xff] }
 0x794   : > { %v1722_v48 = vpop.f32.mrf.mxu0  ;;  %2508 = vmatpush.bf16.msrb.mxu3 %v3421_v25  ;;  %v3657_v25 = vld [vmem:[%s5267_s16] ss:$0 sm:$0xff] }
 0x795   : > { %2521 = vmatpush.bf16.msra.mxu0 %v3429_v27  ;;  %2536 = vmatpush.bf16.msrb.mxu1 %v3435_v39  ;;  %v3432_v48 = vld [vmem:[%s5266_s29 + $0x80] sm:$0xff] }
 0x798   : > { %2509 = vmatpush.bf16.msrb.mxu3 %v3420_v33 }
 0x799   : > { %2522 = vmatpush.bf16.msra.mxu0 %v3428_v34  ;;  %2537 = vmatpush.bf16.msrb.mxu1 %v3434_v43 }
 0x79c   : > { %2510 = vmatpush.bf16.msrb.mxu3 %v3419_v40 }
 0x79d   : > { %2523 = vmatpush.bf16.msra.mxu0 %v3427_v41  ;;  %2538 = vmatpush.bf16.msrb.mxu1 %v3433_v44 }
 0x7a0   : > { %2511 = vmatpush.bf16.msrb.mxu3 %v3418_v45 }
 0x7a1   : > { %2524 = vmatpush.bf16.msra.mxu0 %v3426_v46  ;;  %2539 = vmatpush.bf16.msrb.mxu1 %v3432_v48 }
 0x7a4   : > { %2512 = vmatpush.bf16.msrb.mxu3 %v3417_v49 }
 0x7a5   : > { %2525 = vmatpush.bf16.msra.mxu0 %v3425_v50 }
 0x7a8   : > { %2513 = vmatpush.bf16.msrb.mxu3 %v3416_v52 }
 0x7a9   : > { %2526 = vmatpush.bf16.msra.mxu0 %v3424_v53 }
 0x800   : > { %v2067_v10 = vpop.f32.mrf.mxu1 }
 0x801   : > { %v2068_v17 = vadd.f32 %v3656_v11, %v2067_v10 }
 0x807   : > { %v2080_v3 = vpop.f32.mrf.mxu2 }
 0x808   : > { %v2069_v13 = vpop.f32.mrf.mxu1  ;;  %v2081_v21 = vadd.f32 %v2080_v3, %v2068_v17 }
 0x809   : > { %v2106_v12 = vpop.f32.mrf.mxu0 }
 0x80e   : > { %v2093_v22 = vpop.f32.mrf.mxu3 }
 0x80f   : > { %v2094_v23 = vadd.f32 %v2093_v22, %v2081_v21  ;;  %v2082_v26 = vpop.f32.mrf.mxu2 }
 0x810   : > { %v2119_v30 = vpop.f32.mrf.mxu1 }
 0x811   : > { %v2108_v28 = vpop.f32.mrf.mxu0  ;;  %v2107_v29 = vadd.f32 %v2106_v12, %v2094_v23 }
 0x813   : > { %v2120_v31 = vadd.f32 %v2119_v30, %v2107_v29 }
 0x815   : > { %v2123_v35 = vmax.f32 %v2120_v31, 0.0 }
 0x816   : > { %v2095_v36 = vpop.f32.mrf.mxu3 }
 0x817   : > { %v2124_v38 = vpack.c.bf16 %v2123_v35, %v2123_v35 }
 0x818   : > { %v2121_v42 = vpop.f32.mrf.mxu1 }
 0x819   : > { %3209 = vmatmul.msk.bf16.vlgmr.msra.gmra.mxu2 %vm1220_vm1, %v2124_v38  ;;  %3210 = vmatmul.msk.bf16.vlgmr.msra.gmra.mxu3 %vm1220_vm1, %v2124_v38 }
 0x81a   : > { %3211 = vmatmul.msk.bf16.vlgmr.msrb.gmra.mxu0 %vm1220_vm1, %v2124_v38  ;;  %2545 = vmatpush.bf16.msra.mxu2 %v3447_v37 }
 0x81e   : > { %2546 = vmatpush.bf16.msra.mxu2 %v3446_v47 }
 0x822   : > { %2547 = vmatpush.bf16.msra.mxu2 %v3445_v51 }
 0x826   : > { %2548 = vmatpush.bf16.msra.mxu2 %v3444_v54 }
 0x829   : > { %3212 = vmatmul.msk.bf16.vlgmr.msrb.gmra.mxu2 %vm1220_vm1, %v2124_v38 }
 0x82a   : > { %2549 = vmatpush.bf16.msra.mxu2 %v3443_v55 }
 0x82e   : > { %2550 = vmatpush.bf16.msra.mxu2 %v3442_v56 }
 0x832   : > { %2551 = vmatpush.bf16.msra.mxu2 %v3441_v57 }
 0x836   : > { %2552 = vmatpush.bf16.msra.mxu2 %v3440_v58 }
 0x897   : > { %v2221_v61 = vpop.f32.mrf.mxu0 }
 0x898   : > { %v2222_v62 = vadd.f32 %v2221_v61, %v2137_v60 }
 0x89a   : > { %v2240_v1 = vmax.f32 %v2222_v62, 0.0 }
 0x89c   : > { %v2244_v2 = vpack.c.bf16 %v2240_v1, %v2240_v1  ;;  %v2195_v4 = vpop.f32.mrf.mxu2  ;;  %v2208_v5 = vpop.f32.mrf.mxu3 }
 0x89d   : > { %v2196_v6 = vadd.f32 %v2195_v4, %v2135_v63  ;;  %v2209_v7 = vadd.f32 %v2208_v5, %v2136_v0 }
 0x89e   : > { %2540 = vmatmul.bf16.vlgmr.msrb.gmra.mxu1 %v2244_v2 }
 0x89f   : > { %v2238_v8 = vmax.f32 %v2196_v6, 0.0  ;;  %v2239_v9 = vmax.f32 %v2209_v7, 0.0  ;;  %v2223_v10 = vpop.f32.mrf.mxu0 }
 0x8a1   : > { %v2242_v11 = vpack.c.bf16 %v2238_v8, %v2238_v8  ;;  %v2243_v3 = vpack.c.bf16 %v2239_v9, %v2239_v9 }
 0x8a3   : > { %2514 = vmatmul.bf16.vlgmr.msrb.gmra.mxu3 %v2242_v11  ;;  %2527 = vmatmul.bf16.vlgmr.msra.gmra.mxu0 %v2243_v3 }
 0x8a4   : > { %v2197_v12 = vpop.f32.mrf.mxu2  ;;  %v2210_v13 = vpop.f32.mrf.mxu3 }
 0x8ac   : > { %v2234_v15 = vpop.f32.mrf.mxu2 }
 0x8ad   : > { %v2235_v16 = vadd.f32 %v2234_v15, %v2138_v14 }
 0x8af   : > { %v2241_v17 = vmax.f32 %v2235_v16, 0.0 }
 0x8b1   : > { %v2245_v18 = vpack.c.bf16 %v2241_v17, %v2241_v17 }
 0x8b3   : > { %2553 = vmatmul.bf16.vlgmr.msra.gmra.mxu2 %v2245_v18 }
 0x8b4   : > { %v2236_v19 = vpop.f32.mrf.mxu2 }
 0x91b   : > { %v2541_v20 = vpop.f32.mrf.mxu1 }
 0x920   : > { %v2528_v21 = vpop.f32.mrf.mxu0 }
 0x923   : > { %v2543_v22 = vpop.f32.mrf.mxu1 }
 0x926   : > { %v2515_v23 = vpop.f32.mrf.mxu3 }
 0x927   : > { %v2516_v26 = vadd.f32 %v3657_v25, %v2515_v23 }
 0x928   : > { %v2530_v24 = vpop.f32.mrf.mxu0 }
 0x929   : > { %v2529_v28 = vadd.f32 %v2528_v21, %v2516_v26 }
 0x92b   : > { %v2542_v29 = vadd.f32 %v2541_v20, %v2529_v28 }
 0x92e   : > { %v2517_v27 = vpop.f32.mrf.mxu3 }
 0x936   : > { %v2554_v30 = vpop.f32.mrf.mxu2 }
 0x937   : > { %v2555_v31 = vadd.f32 %v2554_v30, %v2542_v29 }
 0x939   : > { %2558 = vst [vmem:[%s4673_s4] sm:$0xff] %v2555_v31 }
 0x93e   : > { %v2556_v32 = vpop.f32.mrf.mxu2 }
 0x93f PF: > { %s5268_s20 = sld [smem:[#allocation38_spill]]  ;;  %s2572_s14 = sshll.u32 %s4673_s4, 4  ;;  %s2573_s14 = int_to_ptr.vmem [resolvable:$true] %s2572_s14 }
 0x940   : > { %s5270_s17 = sld [smem:[#allocation72_spill]]  ;;  %s2560_s6 = scalar_lea.sflag [#allocation6], %s4602_s11 }
 0x945   : > { %s3342_s1 = sshll.u32 %s5268_s20, 3 }
 0x946   : > { %s2570_s12 = scalar_lea.hbm %s5270_s17, %s3342_s1  ;;  %s4068_s26 = scalar_lea.hbm %s5270_s17, 16 }
 0x947   : > { %s2574_s9 = sshll.u32 %s2570_s12, 4  ;;  %s2575_s9 = int_to_ptr.hbm [resolvable:$true] %s2574_s9 }
 0x948   : > { %s4062_s13 = sshra.s32 %s2575_s9, 4  ;;  %s4063_s13 = int_to_ptr.hbm [resolvable:$true] %s4062_s13 }
 0x949   : > { %s4064_s28 = scalar_lea.hbm %s4063_s13, 8  ;;  %p4069_p2 = scmp.lt.s32.totalorder %s4063_s13, %s5270_s17 }
 0x94a   : > { %p4065_p10 = scmp.ne.s32.totalorder %s4063_s13, %s4064_s28  ;;  %p4070_p4 = scmp.lt.s32.totalorder %s4068_s26, %s4064_s28 }
 0x94c   : > { %p4066_p12 = pnand %p4065_p10, %p4522_p11  ;;  %p4071_p3 = por %p4070_p4, %p4069_p2 }
 0x94e   : > { %p4067_p0 = pneg %p4066_p12 }
 0x950   : > { %p4072_p9 = pnand %p4071_p3, %p4067_p0 }
 0x952   : > { %4075 = shalt.err (!%p4072_p9)
}
 0x953   : > { %3478 = dma.vmem_to_hbm [thread:$0]  (%p4522_p11), %s2573_s14, 128, %s2575_s9, %s2560_s6  }
 0x954 PF: > { %p3530_p13 = scmp.ge.s32.totalorder %s4194_s7, 2  ;;  %s2586_s11 = sand.u32 1, %s4166_s25  }
 0x955   : > { %s2587_s4 = scalar_lea.sflag [#allocation6], %s2586_s11 }
 0x956   : > { %p3522_p5 = pnand %p3530_p13, %p4539_p1 }
 0x958   : > { %p3523_p6 = pneg %p3522_p5 }
 0x95a   : > { %4149 = dma.done.wait (%p3523_p6), %s2587_s4, 128  }
 0x95b   : > { %4151 = vsyncadd (%p3523_p6), %s2587_s4, 4294967168  ;;  %s55_s7 = sadd.s32 1, %s4194_s7   ;;  %s5271_s4 = sld [smem:[#allocation34_spill]] }
 0x95c   : > { %p52_p7 = scmp.ge.s32.totalorder %s55_s7, 6   ;;  %s5272_s3 = sld [smem:[#allocation47_spill]] }
 0x95d   : > { %s5273_s25 = sld [smem:[#allocation35_spill]]  ;;  %s5280_s30 = smov %s4162_s24 }
 0x95e   : > { %s5274_s5 = sld [smem:[#allocation36_spill]] }
 0x95f   : > { %s5275_s1 = sld [smem:[#allocation48_spill]]  ;;  %54 = sbr.rel (!%p52_p7) target bundleno = 45 (0x2d), region = 305 }
 0x960   : > { %s5276_s26 = sld [smem:[#allocation39_spill]] }
 0x961   : > { %s5277_s2 = sld [smem:[#allocation40_spill]] }
 0x962   : > { %s5278_s6 = sld [smem:[#allocation44_spill]]  ;;  %s5281_s24 = smov %s5272_s3 }
 0x963   : > { %s5279_s27 = sld [smem:[#allocation46_spill]] }
 0x964   :  { %2593 = vsyncpa [#allocation5], 1 }
 0x965   :  { %2595 = vsyncpa [#allocation5 + $0x1], 1 }
 0x966   :  { %2596 = vsyncpa [#allocation8], 1 }
 0x967   :  { %2598 = vsyncpa [#allocation8 + $0x1], 1 }
 0x968   :  { %2599 = vsyncpa [#allocation11], 1 }
 0x969   :  { %2601 = vsyncpa [#allocation11 + $0x1], 1 }
 0x96a   :  { %2602 = vsyncpa [#allocation14], 1 }
 0x96b   :  { %2604 = vsyncpa [#allocation14 + $0x1], 1 }
 0x96c   :  { %2605 = vsyncpa [#allocation17], 1 }
 0x96d   :  { %2607 = vsyncpa [#allocation17 + $0x1], 1 }
 0x96e   :  { %2608 = vsyncpa [#allocation20], 1 }
 0x96f   :  { %2610 = vsyncpa [#allocation20 + $0x1], 1 }
 0x970   :  { %2611 = vsyncpa [#allocation23], 1 }
 0x971   :  { %2612 = vsyncpa [#allocation6], 1 }
 0x972   :  { %2614 = vsyncpa [#allocation6 + $0x1], 1 }

</bundles_post_ra>
